<compile_context>
chip_gen: v7x
topology: tpu7x:2x2x1
jax: 0.10.0
libtpu: 0.0.40
codegen_flags: <defaults>
</compile_context>

<pallas_src>
import functools

import jax
import jax.numpy as jnp
from jax.experimental import pallas as pl
from jax.experimental.pallas import tpu as pltpu

SELU_SCALE = 1.0507009873554805
LANE = 128
SUBLANE = 8


def _round_up(a, b):
    return (a + b - 1) // b * b


def _padded_bytes(shape, dtype):
    """VMEM footprint of one buffer, including lane/sublane tile padding."""
    item = jnp.dtype(dtype).itemsize
    dims = list(shape) if shape else [1]
    dims[-1] = _round_up(dims[-1], LANE)
    if len(dims) >= 2:
        pack = max(1, 4 // item)                     # sublane packing for <32-bit dtypes
        dims[-2] = _round_up(dims[-2], SUBLANE * pack)
    n = 1
    for d in dims:
        n *= d
    return n * item


def jungle_kernel(x_ref, wx_ref, wh_ref, bj_ref, wo_ref, bo_ref, out_ref,
                  xw_scr, h_scr, *, n_hidden, internal_dim, compute_dtype):
    """One batch tile of the whole forward pass.

    x_ref   : (Bt, n_inputs)            bf16 VMEM
    wx_ref  : (n_inputs, n_hidden*dim)  bf16 VMEM  (x-part of every layer, fused)
    wh_ref  : (tri_rows, dim)           bf16 VMEM  (triangular pack of hidden parts)
    bj_ref  : (n_hidden, 1, dim)        f32  VMEM
    wo_ref  : (dim, n_out_pad)          bf16 VMEM  (zero-padded columns)
    bo_ref  : (1, n_out_pad)            f32  VMEM
    out_ref : (Bt, n_out_pad)           bf16 VMEM  (lane-dense store)
    xw_scr  : (Bt, n_hidden*dim)        f32  VMEM scratch (fused x @ Wx_all)
    h_scr   : (Bt, n_hidden*dim)        bf16 VMEM scratch (h_0..h_{i-1} columns)
    """
    dim = internal_dim
    # Fused x-contribution for every layer: one lane-dense MXU matmul (K = n_inputs).
    xw_scr[...] = jnp.dot(x_ref[...], wx_ref[...], preferred_element_type=jnp.float32)

    h = None
    off = 0                      # static row offset of layer i inside the triangular pack
    for i in range(n_hidden):
        lo = i * dim
        acc = xw_scr[:, lo:lo + dim]
        if i > 0:
            # Static triangular K: only the h_0..h_{i-1} columns / weight rows exist.
            acc = acc + jnp.dot(h_scr[:, :lo], wh_ref[off:off + lo, :],
                                preferred_element_type=jnp.float32)
            off += lo
        h = jnp.maximum(acc + bj_ref[i], 0.0)        # jungle_activation = relu (f32)
        if i + 1 < n_hidden:
            h_scr[:, lo:lo + dim] = h.astype(h_scr.dtype)   # store already in bf16

    # F.selu on a ReLU output is a pure scale (negative branch is dead; exact for relu).
    s = (SELU_SCALE * h).astype(compute_dtype)
    out_ref[...] = (jnp.dot(s, wo_ref[...], preferred_element_type=jnp.float32)
                    + bo_ref[...]).astype(out_ref.dtype)    # self.out(x), lane-dense


def init_params(key, n_inputs, n_outputs, internal_dim, n_hidden):
    """PyTorch nn.Linear-style init: U(+-1/sqrt(fan_in)) for weight and bias."""
    keys = jax.random.split(key, 2 * (n_hidden + 1))
    layers = []
    for i in range(n_hidden):
        fan_in = n_inputs + i * internal_dim
        bound = fan_in ** -0.5
        w = jax.random.uniform(keys[2 * i], (fan_in, internal_dim),
                               jnp.float32, -bound, bound)
        b = jax.random.uniform(keys[2 * i + 1], (internal_dim,),
                               jnp.float32, -bound, bound)
        layers.append((w, b))
    bound = internal_dim ** -0.5
    w_out = jax.random.uniform(keys[-2], (internal_dim, n_outputs),
                               jnp.float32, -bound, bound)
    b_out = jax.random.uniform(keys[-1], (n_outputs,), jnp.float32, -bound, bound)
    return layers, (w_out, b_out)


def pack_params(params, *, n_inputs, internal_dim, n_hidden, n_outputs,
                n_out_pad, compute_dtype):
    """Repack per-layer (fan_in, dim) weights into the fused kernel layout."""
    layers, (w_out, b_out) = params
    wx_cols, wh_rows, bj_rows = [], [], []
    for i, (w, b) in enumerate(layers):
        wx_cols.append(w[:n_inputs, :])              # x-part of layer i
        if i > 0:
            wh_rows.append(w[n_inputs:, :])          # hidden part: (i*dim, dim)
        bj_rows.append(b[None, :])
    wx = jnp.concatenate(wx_cols, axis=1)            # (n_inputs, n_hidden*dim)
    if wh_rows:                                      # triangular pack, no zero rows
        wh = jnp.concatenate(wh_rows, axis=0)        # (dim * n_h*(n_h-1)/2, dim)
    else:
        wh = jnp.zeros((2 * SUBLANE, internal_dim), jnp.float32)   # never read
    bj = jnp.stack(bj_rows, axis=0)                  # (n_hidden, 1, dim)
    wo = jnp.zeros((internal_dim, n_out_pad), jnp.float32).at[:, :n_outputs].set(w_out)
    bo = jnp.zeros((1, n_out_pad), jnp.float32).at[0, :n_outputs].set(b_out)
    return (wx.astype(compute_dtype), wh.astype(compute_dtype), bj,
            wo.astype(compute_dtype), bo)


def forward(x, params, *, n_inputs, internal_dim, n_hidden, n_outputs,
            compute_dtype=jnp.bfloat16, out_dtype=jnp.bfloat16, batch_tile=512):
    # x is read by the kernel in bf16: halves the dominant HBM stream.
    # (In a real pipeline, emit x in bf16 upstream so this cast fuses there.)
    xb = x.reshape(x.shape[0], -1).astype(compute_dtype)      # x.view(B, -1)
    batch = xb.shape[0]
    assert xb.shape[1] == n_inputs
    h_cat = n_hidden * internal_dim
    n_out_pad = _round_up(max(n_outputs, LANE), LANE)
    tri_rows = max(internal_dim * n_hidden * (n_hidden - 1) // 2, 2 * SUBLANE)

    b_aligned = _round_up(batch, 2 * SUBLANE)        # 16-row align for bf16 packing
    b_tile = min(batch_tile, b_aligned)
    if b_aligned >= 4 * SUBLANE:
        # Ensure >= 2 grid steps when the batch allows, so the "parallel" grid
        # axis can occupy both TensorCores on v7x.
        b_tile = min(b_tile, _round_up((b_aligned + 1) // 2, 2 * SUBLANE))
    b_pad = _round_up(batch, b_tile)
    if b_pad != batch:
        xb = jnp.pad(xb, ((0, b_pad - batch), (0, 0)))

    wx, wh, bj, wo, bo = pack_params(
        params, n_inputs=n_inputs, internal_dim=internal_dim, n_hidden=n_hidden,
        n_outputs=n_outputs, n_out_pad=n_out_pad, compute_dtype=compute_dtype)

    # Actual VMEM footprint (double-buffered pipelined operands + scratch) + headroom,
    # instead of a blanket 48 MiB (v7x only has 64 MiB per TC).
    vmem_bytes = (
        2 * (_padded_bytes((b_tile, n_inputs), compute_dtype)          # x tile
             + _padded_bytes((b_tile, n_out_pad), out_dtype)           # out tile
             + _padded_bytes((n_inputs, h_cat), compute_dtype)         # wx
             + _padded_bytes((tri_rows, internal_dim), compute_dtype)  # wh
             + _padded_bytes((n_hidden, 1, internal_dim), jnp.float32) # bj
             + _padded_bytes((internal_dim, n_out_pad), compute_dtype) # wo
             + _padded_bytes((1, n_out_pad), jnp.float32))             # bo
        + _padded_bytes((b_tile, h_cat), jnp.float32)                  # xw_scr
        + _padded_bytes((b_tile, h_cat), compute_dtype)                # h_scr
        + (4 << 20))                                                   # compiler headroom
    vmem_bytes = int(min(max(vmem_bytes, 16 << 20), 64 << 20))

    kernel = functools.partial(jungle_kernel, n_hidden=n_hidden,
                               internal_dim=internal_dim,
                               compute_dtype=compute_dtype)

    out_pad = pl.pallas_call(
        kernel,
        out_shape=jax.ShapeDtypeStruct((b_pad, n_out_pad), out_dtype),
        grid=(b_pad // b_tile,),
        in_specs=[
            pl.BlockSpec((b_tile, n_inputs), lambda i: (i, 0)),                  # x
            pl.BlockSpec((n_inputs, h_cat), lambda i: (0, 0)),                   # wx
            pl.BlockSpec((tri_rows, internal_dim), lambda i: (0, 0)),            # wh
            pl.BlockSpec((n_hidden, 1, internal_dim), lambda i: (0, 0, 0)),      # bj
            pl.BlockSpec((internal_dim, n_out_pad), lambda i: (0, 0)),           # wo
            pl.BlockSpec((1, n_out_pad), lambda i: (0, 0)),                      # bo
        ],
        out_specs=pl.BlockSpec((b_tile, n_out_pad), lambda i: (i, 0)),
        scratch_shapes=[pltpu.VMEM((b_tile, h_cat), jnp.float32),     # xw_scr
                        pltpu.VMEM((b_tile, h_cat), compute_dtype)],  # h_scr (bf16)
        compiler_params=pltpu.CompilerParams(
            dimension_semantics=("parallel",),
            vmem_limit_bytes=vmem_bytes),
    )(xb, wx, wh, bj, wo, bo)
    return out_pad[:batch, :n_outputs]


def forward_ref(x, params, *, compute_dtype=jnp.bfloat16):
    """Pure-JAX reference (concat formulation, full SELU, same dot-operand dtype)."""
    layers, (w_out, b_out) = params
    feat = x.reshape(x.shape[0], -1).astype(jnp.float32)
    h = None
    for w, b in layers:
        z = jnp.dot(feat.astype(compute_dtype), w.astype(compute_dtype),
                    preferred_element_type=jnp.float32) + b
        h = jnp.maximum(z, 0.0)
        feat = jnp.concatenate([feat, h], axis=1)
    s = jax.nn.selu(h)
    return jnp.dot(s.astype(compute_dtype), w_out.astype(compute_dtype),
                   preferred_element_type=jnp.float32) + b_out


if __name__ == "__main__":
    key = jax.random.PRNGKey(0)
    kx, kp, kx2 = jax.random.split(key, 3)

    B, C, H, W = 2, 4, 16, 16
    n_inputs = C * H * W          # x.view(B, -1) -> 1024
    n_outputs = 8
    internal_dim = 32
    n_hidden = 10                 # module default

    params = init_params(kp, n_inputs, n_outputs, internal_dim, n_hidden)
    kw = dict(n_inputs=n_inputs, internal_dim=internal_dim,
              n_hidden=n_hidden, n_outputs=n_outputs)

    # 1) Tiny batch (module-consistent shapes; single tile, grid=1).
    x = jax.random.normal(kx, (B, C, H, W), jnp.float32)
    y = jax.block_until_ready(forward(x, params, **kw))
    y_ref = forward_ref(x, params)
    assert y.shape == (B, n_outputs)
    err = float(jnp.max(jnp.abs(y.astype(jnp.float32) - y_ref)))
    assert jnp.allclose(y.astype(jnp.float32), y_ref, atol=2e-3, rtol=1e-2), (
        f"mismatch vs JAX reference (small batch): max abs err {err}")

    # 2) Multi-tile batch: non-multiple-of-8 batch, > 2*batch_tile -> exercises
    #    batch padding and the parallel grid dimension (grid=5 at batch_tile=128).
    B2 = 515
    x2 = jax.random.normal(kx2, (B2, C, H, W), jnp.float32)
    y2 = jax.block_until_ready(forward(x2, params, batch_tile=128, **kw))
    y2_ref = forward_ref(x2, params)
    assert y2.shape == (B2, n_outputs)
    err2 = float(jnp.max(jnp.abs(y2.astype(jnp.float32) - y2_ref)))
    assert jnp.allclose(y2.astype(jnp.float32), y2_ref, atol=2e-3, rtol=1e-2), (
        f"mismatch vs JAX reference (multi-tile batch): max abs err {err2}")

    print("KERNEL_OK")
</pallas_src>

<mosaic_0001>
module attributes {stable_mosaic.version = 11 : i64} {
  func.func @jungle_kernel(%arg0: i32, %arg1: memref<16x1024xbf16, #tpu.memory_space<vmem>>, %arg2: memref<1024x320xbf16, #tpu.memory_space<vmem>>, %arg3: memref<1440x32xbf16, #tpu.memory_space<vmem>>, %arg4: memref<10x1x32xf32, #tpu.memory_space<vmem>>, %arg5: memref<32x128xbf16, #tpu.memory_space<vmem>>, %arg6: memref<1x128xf32, #tpu.memory_space<vmem>>, %arg7: memref<16x128xbf16, #tpu.memory_space<vmem>>, %arg8: memref<16x320xf32, #tpu.memory_space<vmem>>, %arg9: memref<16x320xbf16, #tpu.memory_space<vmem>>) attributes {dimension_semantics = [#tpu.dimension_semantics<parallel>], iteration_bounds = array<i64: 1>, scalar_prefetch = 0 : i64, scratch_operands = 2 : i64, tpu.core_type = #tpu.core_type<tc>, window_params = [{transform_indices = @transform_0, window_bounds = array<i64: 16, 1024>}, {pipeline_mode = #tpu.pipeline_mode<synchronous>, transform_indices = @transform_1, window_bounds = array<i64: 1024, 320>}, {pipeline_mode = #tpu.pipeline_mode<synchronous>, transform_indices = @transform_2, window_bounds = array<i64: 1440, 32>}, {pipeline_mode = #tpu.pipeline_mode<synchronous>, transform_indices = @transform_3, window_bounds = array<i64: 10, 1, 32>}, {pipeline_mode = #tpu.pipeline_mode<synchronous>, transform_indices = @transform_4, window_bounds = array<i64: 32, 128>}, {pipeline_mode = #tpu.pipeline_mode<synchronous>, transform_indices = @transform_5, window_bounds = array<i64: 1, 128>}, {transform_indices = @transform_6, window_bounds = array<i64: 16, 128>}]} {
    %c0 = arith.constant 0 : index
    %c0_0 = arith.constant 0 : index
    %0 = vector.load %arg1[%c0, %c0_0] : memref<16x1024xbf16, #tpu.memory_space<vmem>>, vector<16x1024xbf16>
    %c0_1 = arith.constant 0 : index
    %c0_2 = arith.constant 0 : index
    %1 = vector.load %arg2[%c0_1, %c0_2] : memref<1024x320xbf16, #tpu.memory_space<vmem>>, vector<1024x320xbf16>
    %cst = arith.constant dense<0.000000e+00> : vector<16x320xf32>
    %2 = tpu.matmul %0, %1, %cst {dimension_numbers = #tpu.dot_dimension_numbers<[1], [0], [0], [1], [0, 0, 1, 1], [], []>} : vector<16x1024xbf16>, vector<1024x320xbf16>, vector<16x320xf32> -> vector<16x320xf32>
    %c0_3 = arith.constant 0 : index
    %c0_4 = arith.constant 0 : index
    %3 = vector.load %arg8[%c0_3, %c0_4] : memref<16x320xf32, #tpu.memory_space<vmem>>, vector<16x320xf32>
    tpu.vector_store %arg8[%c0_3, %c0_4], %2 {strides = array<i32>} : memref<16x320xf32, #tpu.memory_space<vmem>>, vector<16x320xf32>,
    %c0_5 = arith.constant 0 : index
    %c0_6 = arith.constant 0 : index
    %4 = vector.load %arg8[%c0_5, %c0_6] : memref<16x320xf32, #tpu.memory_space<vmem>>, vector<16x32xf32>
    %c0_7 = arith.constant 0 : index
    %c0_8 = arith.constant 0 : index
    %c0_9 = arith.constant 0 : index
    %5 = vector.load %arg4[%c0_7, %c0_8, %c0_9] : memref<10x1x32xf32, #tpu.memory_space<vmem>>, vector<1x1x32xf32>
    %6 = vector.shape_cast %5 : vector<1x1x32xf32> to vector<1x32xf32>
    %7 = vector.broadcast %6 : vector<1x32xf32> to vector<16x32xf32>
    %8 = arith.addf %4, %7 : vector<16x32xf32>
    %cst_10 = arith.constant 0.000000e+00 : f32
    %9 = vector.broadcast %cst_10 : f32 to vector<16x32xf32>
    %10 = arith.maximumf %8, %9 : vector<16x32xf32>
    %11 = arith.truncf %10 : vector<16x32xf32> to vector<16x32xbf16>
    %c0_11 = arith.constant 0 : index
    %c0_12 = arith.constant 0 : index
    %12 = vector.load %arg9[%c0_11, %c0_12] : memref<16x320xbf16, #tpu.memory_space<vmem>>, vector<16x32xbf16>
    tpu.vector_store %arg9[%c0_11, %c0_12], %11 {strides = array<i32>} : memref<16x320xbf16, #tpu.memory_space<vmem>>, vector<16x32xbf16>,
    %c0_13 = arith.constant 0 : index
    %c32 = arith.constant 32 : index
    %13 = vector.load %arg8[%c0_13, %c32] : memref<16x320xf32, #tpu.memory_space<vmem>>, vector<16x32xf32>
    %c0_14 = arith.constant 0 : index
    %c0_15 = arith.constant 0 : index
    %14 = vector.load %arg9[%c0_14, %c0_15] : memref<16x320xbf16, #tpu.memory_space<vmem>>, vector<16x32xbf16>
    %c0_16 = arith.constant 0 : index
    %c0_17 = arith.constant 0 : index
    %15 = vector.load %arg3[%c0_16, %c0_17] : memref<1440x32xbf16, #tpu.memory_space<vmem>>, vector<32x32xbf16>
    %cst_18 = arith.constant dense<0.000000e+00> : vector<16x32xf32>
    %16 = tpu.matmul %14, %15, %cst_18 {dimension_numbers = #tpu.dot_dimension_numbers<[1], [0], [0], [1], [0, 0, 1, 1], [], []>} : vector<16x32xbf16>, vector<32x32xbf16>, vector<16x32xf32> -> vector<16x32xf32>
    %17 = arith.addf %13, %16 : vector<16x32xf32>
    %c1 = arith.constant 1 : index
    %c0_19 = arith.constant 0 : index
    %c0_20 = arith.constant 0 : index
    %18 = vector.load %arg4[%c1, %c0_19, %c0_20] : memref<10x1x32xf32, #tpu.memory_space<vmem>>, vector<1x1x32xf32>
    %19 = vector.shape_cast %18 : vector<1x1x32xf32> to vector<1x32xf32>
    %20 = vector.broadcast %19 : vector<1x32xf32> to vector<16x32xf32>
    %21 = arith.addf %17, %20 : vector<16x32xf32>
    %cst_21 = arith.constant 0.000000e+00 : f32
    %22 = vector.broadcast %cst_21 : f32 to vector<16x32xf32>
    %23 = arith.maximumf %21, %22 : vector<16x32xf32>
    %24 = arith.truncf %23 : vector<16x32xf32> to vector<16x32xbf16>
    %c0_22 = arith.constant 0 : index
    %c32_23 = arith.constant 32 : index
    %25 = vector.load %arg9[%c0_22, %c32_23] : memref<16x320xbf16, #tpu.memory_space<vmem>>, vector<16x32xbf16>
    tpu.vector_store %arg9[%c0_22, %c32_23], %24 {strides = array<i32>} : memref<16x320xbf16, #tpu.memory_space<vmem>>, vector<16x32xbf16>,
    %c0_24 = arith.constant 0 : index
    %c64 = arith.constant 64 : index
    %26 = vector.load %arg8[%c0_24, %c64] : memref<16x320xf32, #tpu.memory_space<vmem>>, vector<16x32xf32>
    %c0_25 = arith.constant 0 : index
    %c0_26 = arith.constant 0 : index
    %27 = vector.load %arg9[%c0_25, %c0_26] : memref<16x320xbf16, #tpu.memory_space<vmem>>, vector<16x64xbf16>
    %c32_27 = arith.constant 32 : index
    %c0_28 = arith.constant 0 : index
    %28 = vector.load %arg3[%c32_27, %c0_28] : memref<1440x32xbf16, #tpu.memory_space<vmem>>, vector<64x32xbf16>
    %cst_29 = arith.constant dense<0.000000e+00> : vector<16x32xf32>
    %29 = tpu.matmul %27, %28, %cst_29 {dimension_numbers = #tpu.dot_dimension_numbers<[1], [0], [0], [1], [0, 0, 1, 1], [], []>} : vector<16x64xbf16>, vector<64x32xbf16>, vector<16x32xf32> -> vector<16x32xf32>
    %30 = arith.addf %26, %29 : vector<16x32xf32>
    %c2 = arith.constant 2 : index
    %c0_30 = arith.constant 0 : index
    %c0_31 = arith.constant 0 : index
    %31 = vector.load %arg4[%c2, %c0_30, %c0_31] : memref<10x1x32xf32, #tpu.memory_space<vmem>>, vector<1x1x32xf32>
    %32 = vector.shape_cast %31 : vector<1x1x32xf32> to vector<1x32xf32>
    %33 = vector.broadcast %32 : vector<1x32xf32> to vector<16x32xf32>
    %34 = arith.addf %30, %33 : vector<16x32xf32>
    %cst_32 = arith.constant 0.000000e+00 : f32
    %35 = vector.broadcast %cst_32 : f32 to vector<16x32xf32>
    %36 = arith.maximumf %34, %35 : vector<16x32xf32>
    %37 = arith.truncf %36 : vector<16x32xf32> to vector<16x32xbf16>
    %c0_33 = arith.constant 0 : index
    %c64_34 = arith.constant 64 : index
    %38 = vector.load %arg9[%c0_33, %c64_34] : memref<16x320xbf16, #tpu.memory_space<vmem>>, vector<16x32xbf16>
    tpu.vector_store %arg9[%c0_33, %c64_34], %37 {strides = array<i32>} : memref<16x320xbf16, #tpu.memory_space<vmem>>, vector<16x32xbf16>,
    %c0_35 = arith.constant 0 : index
    %c96 = arith.constant 96 : index
    %39 = vector.load %arg8[%c0_35, %c96] : memref<16x320xf32, #tpu.memory_space<vmem>>, vector<16x32xf32>
    %c0_36 = arith.constant 0 : index
    %c0_37 = arith.constant 0 : index
    %40 = vector.load %arg9[%c0_36, %c0_37] : memref<16x320xbf16, #tpu.memory_space<vmem>>, vector<16x96xbf16>
    %c96_38 = arith.constant 96 : index
    %c0_39 = arith.constant 0 : index
    %41 = vector.load %arg3[%c96_38, %c0_39] : memref<1440x32xbf16, #tpu.memory_space<vmem>>, vector<96x32xbf16>
    %cst_40 = arith.constant dense<0.000000e+00> : vector<16x32xf32>
    %42 = tpu.matmul %40, %41, %cst_40 {dimension_numbers = #tpu.dot_dimension_numbers<[1], [0], [0], [1], [0, 0, 1, 1], [], []>} : vector<16x96xbf16>, vector<96x32xbf16>, vector<16x32xf32> -> vector<16x32xf32>
    %43 = arith.addf %39, %42 : vector<16x32xf32>
    %c3 = arith.constant 3 : index
    %c0_41 = arith.constant 0 : index
    %c0_42 = arith.constant 0 : index
    %44 = vector.load %arg4[%c3, %c0_41, %c0_42] : memref<10x1x32xf32, #tpu.memory_space<vmem>>, vector<1x1x32xf32>
    %45 = vector.shape_cast %44 : vector<1x1x32xf32> to vector<1x32xf32>
    %46 = vector.broadcast %45 : vector<1x32xf32> to vector<16x32xf32>
    %47 = arith.addf %43, %46 : vector<16x32xf32>
    %cst_43 = arith.constant 0.000000e+00 : f32
    %48 = vector.broadcast %cst_43 : f32 to vector<16x32xf32>
    %49 = arith.maximumf %47, %48 : vector<16x32xf32>
    %50 = arith.truncf %49 : vector<16x32xf32> to vector<16x32xbf16>
    %c0_44 = arith.constant 0 : index
    %c96_45 = arith.constant 96 : index
    %51 = vector.load %arg9[%c0_44, %c96_45] : memref<16x320xbf16, #tpu.memory_space<vmem>>, vector<16x32xbf16>
    tpu.vector_store %arg9[%c0_44, %c96_45], %50 {strides = array<i32>} : memref<16x320xbf16, #tpu.memory_space<vmem>>, vector<16x32xbf16>,
    %c0_46 = arith.constant 0 : index
    %c128 = arith.constant 128 : index
    %52 = vector.load %arg8[%c0_46, %c128] : memref<16x320xf32, #tpu.memory_space<vmem>>, vector<16x32xf32>
    %c0_47 = arith.constant 0 : index
    %c0_48 = arith.constant 0 : index
    %53 = vector.load %arg9[%c0_47, %c0_48] : memref<16x320xbf16, #tpu.memory_space<vmem>>, vector<16x128xbf16>
    %c192 = arith.constant 192 : index
    %c0_49 = arith.constant 0 : index
    %54 = vector.load %arg3[%c192, %c0_49] : memref<1440x32xbf16, #tpu.memory_space<vmem>>, vector<128x32xbf16>
    %cst_50 = arith.constant dense<0.000000e+00> : vector<16x32xf32>
    %55 = tpu.matmul %53, %54, %cst_50 {dimension_numbers = #tpu.dot_dimension_numbers<[1], [0], [0], [1], [0, 0, 1, 1], [], []>} : vector<16x128xbf16>, vector<128x32xbf16>, vector<16x32xf32> -> vector<16x32xf32>
    %56 = arith.addf %52, %55 : vector<16x32xf32>
    %c4 = arith.constant 4 : index
    %c0_51 = arith.constant 0 : index
    %c0_52 = arith.constant 0 : index
    %57 = vector.load %arg4[%c4, %c0_51, %c0_52] : memref<10x1x32xf32, #tpu.memory_space<vmem>>, vector<1x1x32xf32>
    %58 = vector.shape_cast %57 : vector<1x1x32xf32> to vector<1x32xf32>
    %59 = vector.broadcast %58 : vector<1x32xf32> to vector<16x32xf32>
    %60 = arith.addf %56, %59 : vector<16x32xf32>
    %cst_53 = arith.constant 0.000000e+00 : f32
    %61 = vector.broadcast %cst_53 : f32 to vector<16x32xf32>
    %62 = arith.maximumf %60, %61 : vector<16x32xf32>
    %63 = arith.truncf %62 : vector<16x32xf32> to vector<16x32xbf16>
    %c0_54 = arith.constant 0 : index
    %c128_55 = arith.constant 128 : index
    %64 = vector.load %arg9[%c0_54, %c128_55] : memref<16x320xbf16, #tpu.memory_space<vmem>>, vector<16x32xbf16>
    tpu.vector_store %arg9[%c0_54, %c128_55], %63 {strides = array<i32>} : memref<16x320xbf16, #tpu.memory_space<vmem>>, vector<16x32xbf16>,
    %c0_56 = arith.constant 0 : index
    %c160 = arith.constant 160 : index
    %65 = vector.load %arg8[%c0_56, %c160] : memref<16x320xf32, #tpu.memory_space<vmem>>, vector<16x32xf32>
    %c0_57 = arith.constant 0 : index
    %c0_58 = arith.constant 0 : index
    %66 = vector.load %arg9[%c0_57, %c0_58] : memref<16x320xbf16, #tpu.memory_space<vmem>>, vector<16x160xbf16>
    %c320 = arith.constant 320 : index
    %c0_59 = arith.constant 0 : index
    %67 = vector.load %arg3[%c320, %c0_59] : memref<1440x32xbf16, #tpu.memory_space<vmem>>, vector<160x32xbf16>
    %cst_60 = arith.constant dense<0.000000e+00> : vector<16x32xf32>
    %68 = tpu.matmul %66, %67, %cst_60 {dimension_numbers = #tpu.dot_dimension_numbers<[1], [0], [0], [1], [0, 0, 1, 1], [], []>} : vector<16x160xbf16>, vector<160x32xbf16>, vector<16x32xf32> -> vector<16x32xf32>
    %69 = arith.addf %65, %68 : vector<16x32xf32>
    %c5 = arith.constant 5 : index
    %c0_61 = arith.constant 0 : index
    %c0_62 = arith.constant 0 : index
    %70 = vector.load %arg4[%c5, %c0_61, %c0_62] : memref<10x1x32xf32, #tpu.memory_space<vmem>>, vector<1x1x32xf32>
    %71 = vector.shape_cast %70 : vector<1x1x32xf32> to vector<1x32xf32>
    %72 = vector.broadcast %71 : vector<1x32xf32> to vector<16x32xf32>
    %73 = arith.addf %69, %72 : vector<16x32xf32>
    %cst_63 = arith.constant 0.000000e+00 : f32
    %74 = vector.broadcast %cst_63 : f32 to vector<16x32xf32>
    %75 = arith.maximumf %73, %74 : vector<16x32xf32>
    %76 = arith.truncf %75 : vector<16x32xf32> to vector<16x32xbf16>
    %c0_64 = arith.constant 0 : index
    %c160_65 = arith.constant 160 : index
    %77 = vector.load %arg9[%c0_64, %c160_65] : memref<16x320xbf16, #tpu.memory_space<vmem>>, vector<16x32xbf16>
    tpu.vector_store %arg9[%c0_64, %c160_65], %76 {strides = array<i32>} : memref<16x320xbf16, #tpu.memory_space<vmem>>, vector<16x32xbf16>,
    %c0_66 = arith.constant 0 : index
    %c192_67 = arith.constant 192 : index
    %78 = vector.load %arg8[%c0_66, %c192_67] : memref<16x320xf32, #tpu.memory_space<vmem>>, vector<16x32xf32>
    %c0_68 = arith.constant 0 : index
    %c0_69 = arith.constant 0 : index
    %79 = vector.load %arg9[%c0_68, %c0_69] : memref<16x320xbf16, #tpu.memory_space<vmem>>, vector<16x192xbf16>
    %c480 = arith.constant 480 : index
    %c0_70 = arith.constant 0 : index
    %80 = vector.load %arg3[%c480, %c0_70] : memref<1440x32xbf16, #tpu.memory_space<vmem>>, vector<192x32xbf16>
    %cst_71 = arith.constant dense<0.000000e+00> : vector<16x32xf32>
    %81 = tpu.matmul %79, %80, %cst_71 {dimension_numbers = #tpu.dot_dimension_numbers<[1], [0], [0], [1], [0, 0, 1, 1], [], []>} : vector<16x192xbf16>, vector<192x32xbf16>, vector<16x32xf32> -> vector<16x32xf32>
    %82 = arith.addf %78, %81 : vector<16x32xf32>
    %c6 = arith.constant 6 : index
    %c0_72 = arith.constant 0 : index
    %c0_73 = arith.constant 0 : index
    %83 = vector.load %arg4[%c6, %c0_72, %c0_73] : memref<10x1x32xf32, #tpu.memory_space<vmem>>, vector<1x1x32xf32>
    %84 = vector.shape_cast %83 : vector<1x1x32xf32> to vector<1x32xf32>
    %85 = vector.broadcast %84 : vector<1x32xf32> to vector<16x32xf32>
    %86 = arith.addf %82, %85 : vector<16x32xf32>
    %cst_74 = arith.constant 0.000000e+00 : f32
    %87 = vector.broadcast %cst_74 : f32 to vector<16x32xf32>
    %88 = arith.maximumf %86, %87 : vector<16x32xf32>
    %89 = arith.truncf %88 : vector<16x32xf32> to vector<16x32xbf16>
    %c0_75 = arith.constant 0 : index
    %c192_76 = arith.constant 192 : index
    %90 = vector.load %arg9[%c0_75, %c192_76] : memref<16x320xbf16, #tpu.memory_space<vmem>>, vector<16x32xbf16>
    tpu.vector_store %arg9[%c0_75, %c192_76], %89 {strides = array<i32>} : memref<16x320xbf16, #tpu.memory_space<vmem>>, vector<16x32xbf16>,
    %c0_77 = arith.constant 0 : index
    %c224 = arith.constant 224 : index
    %91 = vector.load %arg8[%c0_77, %c224] : memref<16x320xf32, #tpu.memory_space<vmem>>, vector<16x32xf32>
    %c0_78 = arith.constant 0 : index
    %c0_79 = arith.constant 0 : index
    %92 = vector.load %arg9[%c0_78, %c0_79] : memref<16x320xbf16, #tpu.memory_space<vmem>>, vector<16x224xbf16>
    %c672 = arith.constant 672 : index
    %c0_80 = arith.constant 0 : index
    %93 = vector.load %arg3[%c672, %c0_80] : memref<1440x32xbf16, #tpu.memory_space<vmem>>, vector<224x32xbf16>
    %cst_81 = arith.constant dense<0.000000e+00> : vector<16x32xf32>
    %94 = tpu.matmul %92, %93, %cst_81 {dimension_numbers = #tpu.dot_dimension_numbers<[1], [0], [0], [1], [0, 0, 1, 1], [], []>} : vector<16x224xbf16>, vector<224x32xbf16>, vector<16x32xf32> -> vector<16x32xf32>
    %95 = arith.addf %91, %94 : vector<16x32xf32>
    %c7 = arith.constant 7 : index
    %c0_82 = arith.constant 0 : index
    %c0_83 = arith.constant 0 : index
    %96 = vector.load %arg4[%c7, %c0_82, %c0_83] : memref<10x1x32xf32, #tpu.memory_space<vmem>>, vector<1x1x32xf32>
    %97 = vector.shape_cast %96 : vector<1x1x32xf32> to vector<1x32xf32>
    %98 = vector.broadcast %97 : vector<1x32xf32> to vector<16x32xf32>
    %99 = arith.addf %95, %98 : vector<16x32xf32>
    %cst_84 = arith.constant 0.000000e+00 : f32
    %100 = vector.broadcast %cst_84 : f32 to vector<16x32xf32>
    %101 = arith.maximumf %99, %100 : vector<16x32xf32>
    %102 = arith.truncf %101 : vector<16x32xf32> to vector<16x32xbf16>
    %c0_85 = arith.constant 0 : index
    %c224_86 = arith.constant 224 : index
    %103 = vector.load %arg9[%c0_85, %c224_86] : memref<16x320xbf16, #tpu.memory_space<vmem>>, vector<16x32xbf16>
    tpu.vector_store %arg9[%c0_85, %c224_86], %102 {strides = array<i32>} : memref<16x320xbf16, #tpu.memory_space<vmem>>, vector<16x32xbf16>,
    %c0_87 = arith.constant 0 : index
    %c256 = arith.constant 256 : index
    %104 = vector.load %arg8[%c0_87, %c256] : memref<16x320xf32, #tpu.memory_space<vmem>>, vector<16x32xf32>
    %c0_88 = arith.constant 0 : index
    %c0_89 = arith.constant 0 : index
    %105 = vector.load %arg9[%c0_88, %c0_89] : memref<16x320xbf16, #tpu.memory_space<vmem>>, vector<16x256xbf16>
    %c896 = arith.constant 896 : index
    %c0_90 = arith.constant 0 : index
    %106 = vector.load %arg3[%c896, %c0_90] : memref<1440x32xbf16, #tpu.memory_space<vmem>>, vector<256x32xbf16>
    %cst_91 = arith.constant dense<0.000000e+00> : vector<16x32xf32>
    %107 = tpu.matmul %105, %106, %cst_91 {dimension_numbers = #tpu.dot_dimension_numbers<[1], [0], [0], [1], [0, 0, 1, 1], [], []>} : vector<16x256xbf16>, vector<256x32xbf16>, vector<16x32xf32> -> vector<16x32xf32>
    %108 = arith.addf %104, %107 : vector<16x32xf32>
    %c8 = arith.constant 8 : index
    %c0_92 = arith.constant 0 : index
    %c0_93 = arith.constant 0 : index
    %109 = vector.load %arg4[%c8, %c0_92, %c0_93] : memref<10x1x32xf32, #tpu.memory_space<vmem>>, vector<1x1x32xf32>
    %110 = vector.shape_cast %109 : vector<1x1x32xf32> to vector<1x32xf32>
    %111 = vector.broadcast %110 : vector<1x32xf32> to vector<16x32xf32>
    %112 = arith.addf %108, %111 : vector<16x32xf32>
    %cst_94 = arith.constant 0.000000e+00 : f32
    %113 = vector.broadcast %cst_94 : f32 to vector<16x32xf32>
    %114 = arith.maximumf %112, %113 : vector<16x32xf32>
    %115 = arith.truncf %114 : vector<16x32xf32> to vector<16x32xbf16>
    %c0_95 = arith.constant 0 : index
    %c256_96 = arith.constant 256 : index
    %116 = vector.load %arg9[%c0_95, %c256_96] : memref<16x320xbf16, #tpu.memory_space<vmem>>, vector<16x32xbf16>
    tpu.vector_store %arg9[%c0_95, %c256_96], %115 {strides = array<i32>} : memref<16x320xbf16, #tpu.memory_space<vmem>>, vector<16x32xbf16>,
    %c0_97 = arith.constant 0 : index
    %c288 = arith.constant 288 : index
    %117 = vector.load %arg8[%c0_97, %c288] : memref<16x320xf32, #tpu.memory_space<vmem>>, vector<16x32xf32>
    %c0_98 = arith.constant 0 : index
    %c0_99 = arith.constant 0 : index
    %118 = vector.load %arg9[%c0_98, %c0_99] : memref<16x320xbf16, #tpu.memory_space<vmem>>, vector<16x288xbf16>
    %c1152 = arith.constant 1152 : index
    %c0_100 = arith.constant 0 : index
    %119 = vector.load %arg3[%c1152, %c0_100] : memref<1440x32xbf16, #tpu.memory_space<vmem>>, vector<288x32xbf16>
    %cst_101 = arith.constant dense<0.000000e+00> : vector<16x32xf32>
    %120 = tpu.matmul %118, %119, %cst_101 {dimension_numbers = #tpu.dot_dimension_numbers<[1], [0], [0], [1], [0, 0, 1, 1], [], []>} : vector<16x288xbf16>, vector<288x32xbf16>, vector<16x32xf32> -> vector<16x32xf32>
    %121 = arith.addf %117, %120 : vector<16x32xf32>
    %c9 = arith.constant 9 : index
    %c0_102 = arith.constant 0 : index
    %c0_103 = arith.constant 0 : index
    %122 = vector.load %arg4[%c9, %c0_102, %c0_103] : memref<10x1x32xf32, #tpu.memory_space<vmem>>, vector<1x1x32xf32>
    %123 = vector.shape_cast %122 : vector<1x1x32xf32> to vector<1x32xf32>
    %124 = vector.broadcast %123 : vector<1x32xf32> to vector<16x32xf32>
    %125 = arith.addf %121, %124 : vector<16x32xf32>
    %cst_104 = arith.constant 0.000000e+00 : f32
    %126 = vector.broadcast %cst_104 : f32 to vector<16x32xf32>
    %127 = arith.maximumf %125, %126 : vector<16x32xf32>
    %cst_105 = arith.constant 1.05070102 : f32
    %128 = vector.broadcast %cst_105 : f32 to vector<16x32xf32>
    %129 = arith.mulf %128, %127 : vector<16x32xf32>
    %130 = arith.truncf %129 : vector<16x32xf32> to vector<16x32xbf16>
    %c0_106 = arith.constant 0 : index
    %c0_107 = arith.constant 0 : index
    %131 = vector.load %arg5[%c0_106, %c0_107] : memref<32x128xbf16, #tpu.memory_space<vmem>>, vector<32x128xbf16>
    %cst_108 = arith.constant dense<0.000000e+00> : vector<16x128xf32>
    %132 = tpu.matmul %130, %131, %cst_108 {dimension_numbers = #tpu.dot_dimension_numbers<[1], [0], [0], [1], [0, 0, 1, 1], [], []>} : vector<16x32xbf16>, vector<32x128xbf16>, vector<16x128xf32> -> vector<16x128xf32>
    %c0_109 = arith.constant 0 : index
    %c0_110 = arith.constant 0 : index
    %133 = vector.load %arg6[%c0_109, %c0_110] : memref<1x128xf32, #tpu.memory_space<vmem>>, vector<1x128xf32>
    %134 = vector.broadcast %133 : vector<1x128xf32> to vector<16x128xf32>
    %135 = arith.addf %132, %134 : vector<16x128xf32>
    %136 = arith.truncf %135 : vector<16x128xf32> to vector<16x128xbf16>
    %c0_111 = arith.constant 0 : index
    %c0_112 = arith.constant 0 : index
    %137 = vector.load %arg7[%c0_111, %c0_112] : memref<16x128xbf16, #tpu.memory_space<vmem>>, vector<16x128xbf16>
    tpu.vector_store %arg7[%c0_111, %c0_112], %136 {strides = array<i32>} : memref<16x128xbf16, #tpu.memory_space<vmem>>, vector<16x128xbf16>,
    return
  }
  func.func @transform_0(%arg0: i32) -> (i32, i32) {
    %c0_i32 = arith.constant 0 : i32
    %c0_i32_0 = arith.constant 0 : i32
    return %arg0, %c0_i32 : i32, i32
  }
  func.func @transform_1(%arg0: i32) -> (i32, i32) {
    %c0_i32 = arith.constant 0 : i32
    %c0_i32_0 = arith.constant 0 : i32
    %c0_i32_1 = arith.constant 0 : i32
    return %c0_i32, %c0_i32_0 : i32, i32
  }
  func.func @transform_2(%arg0: i32) -> (i32, i32) {
    %c0_i32 = arith.constant 0 : i32
    %c0_i32_0 = arith.constant 0 : i32
    %c0_i32_1 = arith.constant 0 : i32
    return %c0_i32, %c0_i32_0 : i32, i32
  }
  func.func @transform_3(%arg0: i32) -> (i32, i32, i32) {
    %c0_i32 = arith.constant 0 : i32
    %c0_i32_0 = arith.constant 0 : i32
    %c0_i32_1 = arith.constant 0 : i32
    %c0_i32_2 = arith.constant 0 : i32
    return %c0_i32, %c0_i32_0, %c0_i32_1 : i32, i32, i32
  }
  func.func @transform_4(%arg0: i32) -> (i32, i32) {
    %c0_i32 = arith.constant 0 : i32
    %c0_i32_0 = arith.constant 0 : i32
    %c0_i32_1 = arith.constant 0 : i32
    return %c0_i32, %c0_i32_0 : i32, i32
  }
  func.func @transform_5(%arg0: i32) -> (i32, i32) {
    %c0_i32 = arith.constant 0 : i32
    %c0_i32_0 = arith.constant 0 : i32
    %c0_i32_1 = arith.constant 0 : i32
    return %c0_i32, %c0_i32_0 : i32, i32
  }
  func.func @transform_6(%arg0: i32) -> (i32, i32) {
    %c0_i32 = arith.constant 0 : i32
    %c0_i32_0 = arith.constant 0 : i32
    return %arg0, %c0_i32 : i32, i32
  }
}

</mosaic_0001>

<bundles_post_ra>
// kernel: tpu_custom_call.1
= control target key start
LH: loop header
LB: loop body
LE: loop exit
PB: predicated region body
PF: predicated region fallthrough
CT: control target
= control target key end

     0   :  { %s5325_s0 = inlined_call_operand.vmem [shape: bf16[16,1024], index: 0, kind: input, shape index: {}]   ;;  %s5326_s1 = inlined_call_operand.vmem [shape: bf16[1024,320], index: 1, kind: input, shape index: {}]   ;;  %s5327_s2 = inlined_call_operand.vmem [shape: bf16[1440,32], index: 2, kind: input, shape index: {}]   ;;  %s5328_s3 = inlined_call_operand.vmem [shape: f32[10,1,32], index: 3, kind: input, shape index: {}]   ;;  %s5329_s4 = inlined_call_operand.vmem [shape: bf16[32,128], index: 4, kind: input, shape index: {}]   ;;  %s5330_s5 = inlined_call_operand.vmem [shape: f32[1,128], index: 5, kind: input, shape index: {}]   ;;  %s5331_s6 = inlined_call_operand.hbm [shape: bf16[16,128], index: 6, kind: output, shape index: {}]  }
   0x1   :  { %v3794_v0 = vld [vmem:[%s5326_s1 + $0x4] ss:$12 sps:$4 sm:$0xff]   ;;  %v3796_v1 = vld [vmem:[%s5326_s1] ss:$12 sps:$4 sm:$0xff]   ;;  %v3797_v2 = vld [vmem:[%s5326_s1 + $0x1c] ss:$12 sps:$4 sm:$0xff]  }
   0x2   :  { %1353 = vmatprep.subr.bf16.mxu0 %v3794_v0  ;;  %v3799_v3 = vld [vmem:[%s5326_s1 + $0x18] ss:$12 sps:$4 sm:$0xff]   ;;  %v3800_v4 = vld [vmem:[%s5326_s1 + $0x34] ss:$12 sps:$4 sm:$0xff]   ;;  %v3802_v5 = vld [vmem:[%s5326_s1 + $0x30] ss:$12 sps:$4 sm:$0xff]  }
   0x3   :  { %1354 = vmatpush1.bf16.msra.mxu0 %v3796_v1  ;;  %v3803_v6 = vld [vmem:[%s5326_s1 + $0x4c] ss:$12 sps:$4 sm:$0xff]   ;;  %v3805_v7 = vld [vmem:[%s5326_s1 + $0x48] ss:$12 sps:$4 sm:$0xff]   ;;  %v3806_v8 = vld [vmem:[%s5326_s1 + $0x64] ss:$12 sps:$4 sm:$0xff]  }
   0x4   :  { %1355 = vmatprep.subr.bf16.mxu0 %v3797_v2  ;;  %v3808_v9 = vld [vmem:[%s5326_s1 + $0x60] ss:$12 sps:$4 sm:$0xff]   ;;  %v3809_v10 = vld [vmem:[%s5326_s1 + $0x7c] ss:$12 sps:$4 sm:$0xff]   ;;  %v3811_v11 = vld [vmem:[%s5326_s1 + $0x78] ss:$12 sps:$4 sm:$0xff]  }
   0x5   :  { %v3812_v12 = vld [vmem:[%s5326_s1 + $0x94] ss:$12 sps:$4 sm:$0xff]   ;;  %v3814_v16 = vld [vmem:[%s5326_s1 + $0x90] ss:$12 sps:$4 sm:$0xff]   ;;  %v3815_v17 = vld [vmem:[%s5326_s1 + $0xac] ss:$12 sps:$4 sm:$0xff]  }
   0x6   :  { %v25_v13 = vld [vmem:[%s5325_s0] sm:$0xff]  ;;  %v3817_v18 = vld [vmem:[%s5326_s1 + $0xa8] ss:$12 sps:$4 sm:$0xff]   ;;  %v3826_v24 = vld [vmem:[%s5326_s1 + $0xf0] ss:$12 sps:$4 sm:$0xff]  }
   0x7   :  { %1356 = vmatpush1.bf16.msra.mxu0 %v3799_v3  ;;  %v29_v14 = vld [vmem:[%s5325_s0 + $0x20] sm:$0xff]  ;;  %v3821_v21 = vld [vmem:[%s5326_s1 + $0xdc] ss:$12 sps:$4 sm:$0xff]   ;;  %v3827_v25 = vld [vmem:[%s5326_s1 + $0x10c] ss:$12 sps:$4 sm:$0xff]  }
   0x8   :  { %1357 = vmatprep.subr.bf16.mxu0 %v3800_v4  ;;  %v3212_v15 = vcombine.high %v25_v13, %v29_v14  ;;  %v3818_v19 = vld [vmem:[%s5326_s1 + $0xc4] ss:$12 sps:$4 sm:$0xff]   ;;  %v3820_v20 = vld [vmem:[%s5326_s1 + $0xc0] ss:$12 sps:$4 sm:$0xff]   ;;  %v3829_v26 = vld [vmem:[%s5326_s1 + $0x108] ss:$12 sps:$4 sm:$0xff]   ;;  %v4324_v38 = vcombine.low %v25_v13, %v29_v14 }
   0x9   :  { %v3823_v22 = vld [vmem:[%s5326_s1 + $0xd8] ss:$12 sps:$4 sm:$0xff]   ;;  %v3824_v23 = vld [vmem:[%s5326_s1 + $0xf4] ss:$12 sps:$4 sm:$0xff]   ;;  %v3833_v29 = vld [vmem:[%s5326_s1 + $0x13c] ss:$12 sps:$4 sm:$0xff]  }
   0xa   :  { %1385 = vmatprep.mubr.bf16.mxu0 %v3212_v15  ;;  %1557 = vmatprep.mubr.bf16.mxu1 %v3212_v15  ;;  %v3830_v27 = vld [vmem:[%s5326_s1 + $0x124] ss:$12 sps:$4 sm:$0xff]   ;;  %v3832_v28 = vld [vmem:[%s5326_s1 + $0x120] ss:$12 sps:$4 sm:$0xff]   ;;  %v3841_v34 = vld [vmem:[%s5326_s1 + $0x168] ss:$12 sps:$4 sm:$0xff]  }
   0xb   :  { %1358 = vmatpush1.bf16.msra.mxu0 %v3802_v5  ;;  %v3835_v30 = vld [vmem:[%s5326_s1 + $0x138] ss:$12 sps:$4 sm:$0xff]   ;;  %v3836_v31 = vld [vmem:[%s5326_s1 + $0x154] ss:$12 sps:$4 sm:$0xff]   ;;  %v3838_v32 = vld [vmem:[%s5326_s1 + $0x150] ss:$12 sps:$4 sm:$0xff]  }
   0xc   :  { %1359 = vmatprep.subr.bf16.mxu0 %v3803_v6  ;;  %v3839_v33 = vld [vmem:[%s5326_s1 + $0x16c] ss:$12 sps:$4 sm:$0xff]   ;;  %v3844_v35 = vld [vmem:[%s5326_s1 + $0x184] ss:$12 sps:$4 sm:$0xff]   ;;  %v3847_v41 = vld [vmem:[%s5326_s1 + $0x19c] ss:$12 sps:$4 sm:$0xff]  }
   0xd   :  { %v4317_v36 = vld [vmem:[%s5325_s0 + $0x8] sm:$0xff]  ;;  %v3845_v42 = vld [vmem:[%s5326_s1 + $0x198] ss:$12 sps:$4 sm:$0xff]   ;;  %v3850_v43 = vld [vmem:[%s5326_s1 + $0x1b4] ss:$12 sps:$4 sm:$0xff]  }
   0xe   :  { %v4322_v37 = vld [vmem:[%s5325_s0 + $0x28] sm:$0xff]  ;;  %v3848_v44 = vld [vmem:[%s5326_s1 + $0x1b0] ss:$12 sps:$4 sm:$0xff]   ;;  %v3857_v50 = vld [vmem:[%s5326_s1 + $0x1f8] ss:$12 sps:$4 sm:$0xff]  }
   0xf   :  { %1360 = vmatpush1.bf16.msra.mxu0 %v3805_v7  ;;  %v3842_v39 = vld [vmem:[%s5326_s1 + $0x180] ss:$12 sps:$4 sm:$0xff]   ;;  %v4331_v40 = vcombine.high %v4317_v36, %v4322_v37  ;;  %v3851_v46 = vld [vmem:[%s5326_s1 + $0x1c8] ss:$12 sps:$4 sm:$0xff]   ;;  %v3856_v47 = vld [vmem:[%s5326_s1 + $0x1e4] ss:$12 sps:$4 sm:$0xff]  }
  0x10   :  { %1361 = vmatprep.subr.bf16.mxu0 %v3806_v8  ;;  %v3853_v45 = vld [vmem:[%s5326_s1 + $0x1cc] ss:$12 sps:$4 sm:$0xff]   ;;  %v3859_v49 = vld [vmem:[%s5326_s1 + $0x1fc] ss:$12 sps:$4 sm:$0xff]   ;;  %v3862_v51 = vld [vmem:[%s5326_s1 + $0x214] ss:$12 sps:$4 sm:$0xff]  }
  0x11   :  { %v3854_v48 = vld [vmem:[%s5326_s1 + $0x1e0] ss:$12 sps:$4 sm:$0xff]   ;;  %v3860_v52 = vld [vmem:[%s5326_s1 + $0x210] ss:$12 sps:$4 sm:$0xff]   ;;  %v3863_v54 = vld [vmem:[%s5326_s1 + $0x228] ss:$12 sps:$4 sm:$0xff]  }
  0x12   :  { %v3865_v53 = vld [vmem:[%s5326_s1 + $0x22c] ss:$12 sps:$4 sm:$0xff]   ;;  %v3868_v55 = vld [vmem:[%s5326_s1 + $0x244] ss:$12 sps:$4 sm:$0xff]   ;;  %v3871_v57 = vld [vmem:[%s5326_s1 + $0x25c] ss:$12 sps:$4 sm:$0xff]  }
  0x13   :  { %1362 = vmatpush1.bf16.msra.mxu0 %v3808_v9  ;;  %v3866_v56 = vld [vmem:[%s5326_s1 + $0x240] ss:$12 sps:$4 sm:$0xff]   ;;  %v3869_v58 = vld [vmem:[%s5326_s1 + $0x258] ss:$12 sps:$4 sm:$0xff]   ;;  %v3872_v60 = vld [vmem:[%s5326_s1 + $0x270] ss:$12 sps:$4 sm:$0xff]  }
  0x14   :  { %1363 = vmatprep.subr.bf16.mxu0 %v3809_v10  ;;  %v3874_v59 = vld [vmem:[%s5326_s1 + $0x274] ss:$12 sps:$4 sm:$0xff]   ;;  %v3877_v61 = vld [vmem:[%s5326_s1 + $0x28c] ss:$12 sps:$4 sm:$0xff]   ;;  %v3880_v63 = vld [vmem:[%s5326_s1 + $0x2a4] ss:$12 sps:$4 sm:$0xff]   ;;  %v4440_v10 = vcombine.low %v4317_v36, %v4322_v37 }
  0x15   :  { %v3875_v62 = vld [vmem:[%s5326_s1 + $0x288] ss:$12 sps:$4 sm:$0xff]   ;;  %v3878_v0 = vld [vmem:[%s5326_s1 + $0x2a0] ss:$12 sps:$4 sm:$0xff]   ;;  %v3881_v2 = vld [vmem:[%s5326_s1 + $0x2b8] ss:$12 sps:$4 sm:$0xff]  }
  0x16   :  { %v3883_v1 = vld [vmem:[%s5326_s1 + $0x2bc] ss:$12 sps:$4 sm:$0xff]   ;;  %v3886_v3 = vld [vmem:[%s5326_s1 + $0x2d4] ss:$12 sps:$4 sm:$0xff]   ;;  %v3889_v5 = vld [vmem:[%s5326_s1 + $0x2ec] ss:$12 sps:$4 sm:$0xff]  }
  0x17   :  { %1364 = vmatpush1.bf16.msra.mxu0 %v3811_v11  ;;  %v3884_v4 = vld [vmem:[%s5326_s1 + $0x2d0] ss:$12 sps:$4 sm:$0xff]   ;;  %v3887_v6 = vld [vmem:[%s5326_s1 + $0x2e8] ss:$12 sps:$4 sm:$0xff]   ;;  %v3890_v11 = vld [vmem:[%s5326_s1 + $0x300] ss:$12 sps:$4 sm:$0xff]  }
  0x18   :  { %1365 = vmatprep.subr.bf16.mxu0 %v3812_v12  ;;  %v3892_v7 = vld [vmem:[%s5326_s1 + $0x304] ss:$12 sps:$4 sm:$0xff]   ;;  %v3895_v12 = vld [vmem:[%s5326_s1 + $0x31c] ss:$12 sps:$4 sm:$0xff]   ;;  %v3910_v36 = vld [vmem:[%s5326_s1 + $0x394] ss:$12 sps:$4 sm:$0xff]  }
  0x19   :  { %v4431_v8 = vld [vmem:[%s5325_s0 + $0x10] sm:$0xff] }
  0x1a   :  { %v4436_v9 = vld [vmem:[%s5325_s0 + $0x30] sm:$0xff] }
  0x1b   :  { %1366 = vmatpush1.bf16.msra.mxu0 %v3814_v16  ;;  %v3986_v13 = vld [vmem:[%s5326_s1 + $0xc8] ss:$12 sps:$4 sm:$0xff]   ;;  %v4453_v14 = vcombine.high %v4431_v8, %v4436_v9  ;;  %v3988_v16 = vld [vmem:[%s5326_s1 + $0xe0] ss:$12 sps:$4 sm:$0xff]   ;;  %v3908_v37 = vld [vmem:[%s5326_s1 + $0x390] ss:$12 sps:$4 sm:$0xff]  }
  0x1c   :  { %1367 = vmatprep.subr.bf16.mxu0 %v3815_v17  ;;  %v3987_v15 = vld [vmem:[%s5326_s1 + $0x8] ss:$12 sps:$4 sm:$0xff]   ;;  %3540 = vmatprep.subr.bf16.mxu1 %v3986_v13  ;;  %v3989_v17 = vld [vmem:[%s5326_s1 + $0x20] ss:$12 sps:$4 sm:$0xff]  }
  0x1d   :  { %3541 = vmatpush3.bf16.msra.mxu1 %v3987_v15  ;;  %v4018_v13 = vld [vmem:[%s5326_s1 + $0x3c8] ss:$12 sps:$4 sm:$0xff]  }
  0x1e   :  { %3542 = vmatprep.subr.bf16.mxu1 %v3988_v16  ;;  %v3935_v15 = vld [vmem:[%s5326_s1 + $0x468] ss:$12 sps:$4 sm:$0xff]   ;;  %v3940_v16 = vld [vmem:[%s5326_s1 + $0x484] ss:$12 sps:$4 sm:$0xff]  }
  0x1f   :  { %1368 = vmatpush1.bf16.msra.mxu0 %v3817_v18  ;;  %v3990_v18 = vld [vmem:[%s5326_s1 + $0xf8] ss:$12 sps:$4 sm:$0xff]  }
  0x20   :  { %1369 = vmatprep.subr.bf16.mxu0 %v3818_v19  ;;  %v3893_v19 = vld [vmem:[%s5326_s1 + $0x318] ss:$12 sps:$4 sm:$0xff]  }
  0x21   :  { %3543 = vmatpush3.bf16.msra.mxu1 %v3989_v17  ;;  %v4648_v17 = vld [vmem:[%s5325_s0 + $0x18] sm:$0xff] }
  0x22   :  { %3544 = vmatprep.subr.bf16.mxu1 %v3990_v18  ;;  %v4653_v18 = vld [vmem:[%s5325_s0 + $0x38] sm:$0xff] }
  0x23   :  { %1370 = vmatpush1.bf16.msra.mxu0 %v3820_v20  ;;  %v3898_v20 = vld [vmem:[%s5326_s1 + $0x334] ss:$12 sps:$4 sm:$0xff]  }
  0x24   :  { %1371 = vmatprep.subr.bf16.mxu0 %v3821_v21  ;;  %v3991_v21 = vld [vmem:[%s5326_s1 + $0x38] ss:$12 sps:$4 sm:$0xff]  }
  0x25   :  { %3545 = vmatpush3.bf16.msra.mxu1 %v3991_v21  ;;  %v3938_v21 = vld [vmem:[%s5326_s1 + $0x480] ss:$12 sps:$4 sm:$0xff]  }
  0x27   :  { %1372 = vmatpush1.bf16.msra.mxu0 %v3823_v22  ;;  %v3992_v22 = vld [vmem:[%s5326_s1 + $0x110] ss:$12 sps:$4 sm:$0xff]  }
  0x28   :  { %1373 = vmatprep.subr.bf16.mxu0 %v3824_v23  ;;  %v3896_v23 = vld [vmem:[%s5326_s1 + $0x330] ss:$12 sps:$4 sm:$0xff]   ;;  %3546 = vmatprep.subr.bf16.mxu1 %v3992_v22  ;;  %v4666_v22 = vcombine.low %v4431_v8, %v4436_v9  ;;  %v4022_v8 = vld [vmem:[%s5326_s1 + $0x3f8] ss:$12 sps:$4 sm:$0xff]  }
  0x29   :  { %v3941_v9 = vld [vmem:[%s5326_s1 + $0x498] ss:$12 sps:$4 sm:$0xff]  }
  0x2b   :  { %1374 = vmatpush1.bf16.msra.mxu0 %v3826_v24  ;;  %v3901_v24 = vld [vmem:[%s5326_s1 + $0x34c] ss:$12 sps:$4 sm:$0xff]  }
  0x2c   :  { %1375 = vmatprep.subr.bf16.mxu0 %v3827_v25  ;;  %v3993_v25 = vld [vmem:[%s5326_s1 + $0x50] ss:$12 sps:$4 sm:$0xff]  }
  0x2d   :  { %3547 = vmatpush3.bf16.msra.mxu1 %v3993_v25  ;;  %v4021_v25 = vld [vmem:[%s5326_s1 + $0x320] ss:$12 sps:$4 sm:$0xff]  }
  0x2f   :  { %1376 = vmatpush1.bf16.msra.mxu0 %v3829_v26  ;;  %v3994_v26 = vld [vmem:[%s5326_s1 + $0x128] ss:$12 sps:$4 sm:$0xff]  }
  0x30   :  { %1377 = vmatprep.subr.bf16.mxu0 %v3830_v27  ;;  %v3899_v27 = vld [vmem:[%s5326_s1 + $0x348] ss:$12 sps:$4 sm:$0xff]   ;;  %3548 = vmatprep.subr.bf16.mxu1 %v3994_v26 }
  0x31   :  { %v3946_v26 = vld [vmem:[%s5326_s1 + $0x4b4] ss:$12 sps:$4 sm:$0xff]  }
  0x33   :  { %1378 = vmatpush1.bf16.msra.mxu0 %v3832_v28  ;;  %v3904_v28 = vld [vmem:[%s5326_s1 + $0x364] ss:$12 sps:$4 sm:$0xff]  }
  0x34   :  { %1379 = vmatprep.subr.bf16.mxu0 %v3833_v29  ;;  %v3995_v29 = vld [vmem:[%s5326_s1 + $0x68] ss:$12 sps:$4 sm:$0xff]  }
  0x35   :  { %3549 = vmatpush3.bf16.msra.mxu1 %v3995_v29  ;;  %v4025_v29 = vld [vmem:[%s5326_s1 + $0x350] ss:$12 sps:$4 sm:$0xff]  }
  0x37   :  { %1380 = vmatpush1.bf16.msra.mxu0 %v3835_v30  ;;  %v3996_v30 = vld [vmem:[%s5326_s1 + $0x140] ss:$12 sps:$4 sm:$0xff]  }
  0x38   :  { %1381 = vmatprep.subr.bf16.mxu0 %v3836_v31  ;;  %v3902_v31 = vld [vmem:[%s5326_s1 + $0x360] ss:$12 sps:$4 sm:$0xff]   ;;  %3550 = vmatprep.subr.bf16.mxu1 %v3996_v30  ;;  %v4026_v30 = vld [vmem:[%s5326_s1 + $0x428] ss:$12 sps:$4 sm:$0xff]  }
  0x3b   :  { %1382 = vmatpush1.bf16.msra.mxu0 %v3838_v32  ;;  %v3907_v32 = vld [vmem:[%s5326_s1 + $0x37c] ss:$12 sps:$4 sm:$0xff]  }
  0x3c   :  { %1383 = vmatprep.subr.bf16.mxu0 %v3839_v33  ;;  %v3997_v33 = vld [vmem:[%s5326_s1 + $0x80] ss:$12 sps:$4 sm:$0xff]  }
  0x3d   :  { %3551 = vmatpush3.bf16.msra.mxu1 %v3997_v33  ;;  %v4027_v33 = vld [vmem:[%s5326_s1 + $0x368] ss:$12 sps:$4 sm:$0xff]  }
  0x3f   :  { %1384 = vmatpush1.bf16.msra.mxu0 %v3841_v34  ;;  %v3998_v34 = vld [vmem:[%s5326_s1 + $0x158] ss:$12 sps:$4 sm:$0xff]  }
  0x40   :  { %1396 = vmatprep.subr.bf16.mxu0 %v3844_v35  ;;  %v3905_v35 = vld [vmem:[%s5326_s1 + $0x378] ss:$12 sps:$4 sm:$0xff]   ;;  %3552 = vmatprep.subr.bf16.mxu1 %v3998_v34  ;;  %v4028_v34 = vld [vmem:[%s5326_s1 + $0x440] ss:$12 sps:$4 sm:$0xff]  }
  0x42   :  { %1386 = vmatmul.mubr.bf16.vlgmr.msra.gmra.mrb[0].mxu0 %v4324_v38 }
  0x43   :  { %1397 = vmatpush1.bf16.msra.mxu0 %v3842_v39  ;;  %1428 = vmatprep.mubr.bf16.mxu0 %v4331_v40  ;;  %v3999_v39 = vld [vmem:[%s5326_s1 + $0x98] ss:$12 sps:$4 sm:$0xff]  }
  0x44   :  { %1398 = vmatprep.subr.bf16.mxu0 %v3847_v41  ;;  %v3913_v41 = vld [vmem:[%s5326_s1 + $0x3ac] ss:$12 sps:$4 sm:$0xff]   ;;  %3553 = vmatpush3.bf16.msra.mxu1 %v3999_v39 }
  0x45   :  { %v4030_v39 = vld [vmem:[%s5326_s1 + $0x458] ss:$12 sps:$4 sm:$0xff]  }
  0x47   :  { %1399 = vmatpush1.bf16.msra.mxu0 %v3845_v42  ;;  %v4000_v42 = vld [vmem:[%s5326_s1 + $0x170] ss:$12 sps:$4 sm:$0xff]  }
  0x48   :  { %1400 = vmatprep.subr.bf16.mxu0 %v3850_v43  ;;  %v4001_v43 = vld [vmem:[%s5326_s1 + $0xb0] ss:$12 sps:$4 sm:$0xff]   ;;  %3554 = vmatprep.subr.bf16.mxu1 %v4000_v42  ;;  %v3958_v42 = vld [vmem:[%s5326_s1 + $0x514] ss:$12 sps:$4 sm:$0xff]  }
  0x49   :  { %3555 = vmatpush3.bf16.msra.mxu1 %v4001_v43  ;;  %v4031_v43 = vld [vmem:[%s5326_s1 + $0x398] ss:$12 sps:$4 sm:$0xff]  }
  0x4b   :  { %1401 = vmatpush1.bf16.msra.mxu0 %v3848_v44  ;;  %v4002_v44 = vld [vmem:[%s5326_s1 + $0x248] ss:$12 sps:$4 sm:$0xff]  }
  0x4c   :  { %1402 = vmatprep.subr.bf16.mxu0 %v3853_v45  ;;  %v3911_v45 = vld [vmem:[%s5326_s1 + $0x3a8] ss:$12 sps:$4 sm:$0xff]   ;;  %3562 = vmatprep.subr.bf16.mxu1 %v4002_v44 }
  0x4d   :  { %1558 = vmatmul.mubr.bf16.vlgmr.msra.gmra.mrb[0].mxu1 %v4324_v38  ;;  %v4007_v38 = vld [vmem:[%s5326_s1 + $0x1b8] ss:$12 sps:$4 sm:$0xff]  }
  0x4e   :  { %1598 = vmatprep.mubr.bf16.mxu1 %v4331_v40  ;;  %v3925_v40 = vld [vmem:[%s5326_s1 + $0x40c] ss:$12 sps:$4 sm:$0xff]  }
  0x4f   :  { %1403 = vmatpush1.bf16.msra.mxu0 %v3851_v46  ;;  %v3916_v46 = vld [vmem:[%s5326_s1 + $0x3c4] ss:$12 sps:$4 sm:$0xff]  }
  0x50   :  { %1404 = vmatprep.subr.bf16.mxu0 %v3856_v47  ;;  %v4003_v47 = vld [vmem:[%s5326_s1 + $0x188] ss:$12 sps:$4 sm:$0xff]  }
  0x51   :  { %3563 = vmatpush3.bf16.msra.mxu1 %v4003_v47 }
  0x53   :  { %1405 = vmatpush1.bf16.msra.mxu0 %v3854_v48  ;;  %v4004_v48 = vld [vmem:[%s5326_s1 + $0x260] ss:$12 sps:$4 sm:$0xff]  }
  0x54   :  { %1406 = vmatprep.subr.bf16.mxu0 %v3859_v49  ;;  %v3914_v49 = vld [vmem:[%s5326_s1 + $0x3c0] ss:$12 sps:$4 sm:$0xff]   ;;  %3564 = vmatprep.subr.bf16.mxu1 %v4004_v48 }
  0x57   :  { %1407 = vmatpush1.bf16.msra.mxu0 %v3857_v50  ;;  %v3919_v50 = vld [vmem:[%s5326_s1 + $0x3dc] ss:$12 sps:$4 sm:$0xff]  }
  0x58   :  { %1408 = vmatprep.subr.bf16.mxu0 %v3862_v51  ;;  %v4005_v51 = vld [vmem:[%s5326_s1 + $0x1a0] ss:$12 sps:$4 sm:$0xff]  }
  0x59   :  { %3565 = vmatpush3.bf16.msra.mxu1 %v4005_v51 }
  0x5b   :  { %1409 = vmatpush1.bf16.msra.mxu0 %v3860_v52  ;;  %v4006_v52 = vld [vmem:[%s5326_s1 + $0x278] ss:$12 sps:$4 sm:$0xff]  }
  0x5c   :  { %1410 = vmatprep.subr.bf16.mxu0 %v3865_v53  ;;  %v3917_v53 = vld [vmem:[%s5326_s1 + $0x3d8] ss:$12 sps:$4 sm:$0xff]   ;;  %3566 = vmatprep.subr.bf16.mxu1 %v4006_v52 }
  0x5d   :  { %3567 = vmatpush3.bf16.msra.mxu1 %v4007_v38 }
  0x5f   :  { %1411 = vmatpush1.bf16.msra.mxu0 %v3863_v54  ;;  %v3922_v54 = vld [vmem:[%s5326_s1 + $0x3f4] ss:$12 sps:$4 sm:$0xff]  }
  0x60   :  { %1412 = vmatprep.subr.bf16.mxu0 %v3868_v55  ;;  %v4008_v55 = vld [vmem:[%s5326_s1 + $0x290] ss:$12 sps:$4 sm:$0xff]  }
  0x61   :  { %3568 = vmatprep.subr.bf16.mxu1 %v4008_v55 }
  0x63   :  { %1413 = vmatpush1.bf16.msra.mxu0 %v3866_v56  ;;  %v3920_v56 = vld [vmem:[%s5326_s1 + $0x3f0] ss:$12 sps:$4 sm:$0xff]  }
  0x64   :  { %1414 = vmatprep.subr.bf16.mxu0 %v3871_v57  ;;  %v4009_v57 = vld [vmem:[%s5326_s1 + $0x1d0] ss:$12 sps:$4 sm:$0xff]  }
  0x65   :  { %3569 = vmatpush3.bf16.msra.mxu1 %v4009_v57 }
  0x67   :  { %1415 = vmatpush1.bf16.msra.mxu0 %v3869_v58  ;;  %v4010_v58 = vld [vmem:[%s5326_s1 + $0x2a8] ss:$12 sps:$4 sm:$0xff]  }
  0x68   :  { %1416 = vmatprep.subr.bf16.mxu0 %v3874_v59  ;;  %v3923_v59 = vld [vmem:[%s5326_s1 + $0x408] ss:$12 sps:$4 sm:$0xff]   ;;  %3570 = vmatprep.subr.bf16.mxu1 %v4010_v58 }
  0x6b   :  { %1417 = vmatpush1.bf16.msra.mxu0 %v3872_v60  ;;  %v3928_v60 = vld [vmem:[%s5326_s1 + $0x424] ss:$12 sps:$4 sm:$0xff]  }
  0x6c   :  { %1418 = vmatprep.subr.bf16.mxu0 %v3877_v61  ;;  %v4011_v61 = vld [vmem:[%s5326_s1 + $0x1e8] ss:$12 sps:$4 sm:$0xff]  }
  0x6d   :  { %3571 = vmatpush3.bf16.msra.mxu1 %v4011_v61 }
  0x6f   :  { %1419 = vmatpush1.bf16.msra.mxu0 %v3875_v62  ;;  %v4012_v62 = vld [vmem:[%s5326_s1 + $0x2c0] ss:$12 sps:$4 sm:$0xff]  }
  0x70   :  { %1420 = vmatprep.subr.bf16.mxu0 %v3880_v63  ;;  %v3926_v63 = vld [vmem:[%s5326_s1 + $0x420] ss:$12 sps:$4 sm:$0xff]   ;;  %3572 = vmatprep.subr.bf16.mxu1 %v4012_v62 }
  0x73   :  { %1421 = vmatpush1.bf16.msra.mxu0 %v3878_v0  ;;  %v3931_v0 = vld [vmem:[%s5326_s1 + $0x43c] ss:$12 sps:$4 sm:$0xff]  }
  0x74   :  { %1422 = vmatprep.subr.bf16.mxu0 %v3883_v1  ;;  %v4013_v1 = vld [vmem:[%s5326_s1 + $0x200] ss:$12 sps:$4 sm:$0xff]  }
  0x75   :  { %3573 = vmatpush3.bf16.msra.mxu1 %v4013_v1 }
  0x77   :  { %1423 = vmatpush1.bf16.msra.mxu0 %v3881_v2  ;;  %v4014_v2 = vld [vmem:[%s5326_s1 + $0x2d8] ss:$12 sps:$4 sm:$0xff]  }
  0x78   :  { %1424 = vmatprep.subr.bf16.mxu0 %v3886_v3  ;;  %v3929_v3 = vld [vmem:[%s5326_s1 + $0x438] ss:$12 sps:$4 sm:$0xff]   ;;  %3574 = vmatprep.subr.bf16.mxu1 %v4014_v2 }
  0x7b   :  { %1425 = vmatpush1.bf16.msra.mxu0 %v3884_v4  ;;  %v3934_v4 = vld [vmem:[%s5326_s1 + $0x454] ss:$12 sps:$4 sm:$0xff]  }
  0x7c   :  { %1426 = vmatprep.subr.bf16.mxu0 %v3889_v5  ;;  %v4015_v5 = vld [vmem:[%s5326_s1 + $0x218] ss:$12 sps:$4 sm:$0xff]  }
  0x7d   :  { %3575 = vmatpush3.bf16.msra.mxu1 %v4015_v5 }
  0x7f   :  { %1427 = vmatpush1.bf16.msra.mxu0 %v3887_v6  ;;  %v4016_v6 = vld [vmem:[%s5326_s1 + $0x2f0] ss:$12 sps:$4 sm:$0xff]  }
  0x80   :  { %1439 = vmatprep.subr.bf16.mxu0 %v3892_v7  ;;  %v3932_v7 = vld [vmem:[%s5326_s1 + $0x450] ss:$12 sps:$4 sm:$0xff]   ;;  %3576 = vmatprep.subr.bf16.mxu1 %v4016_v6 }
  0x82   :  { %1429 = vmatmul.mubr.bf16.vlgmr.msra.gmra.mrb[0].mxu0 %v4440_v10 }
  0x83   :  { %1440 = vmatpush1.bf16.msra.mxu0 %v3890_v11  ;;  %1471 = vmatprep.mubr.bf16.mxu0 %v4453_v14  ;;  %v3937_v11 = vld [vmem:[%s5326_s1 + $0x46c] ss:$12 sps:$4 sm:$0xff]  }
  0x84   :  { %1441 = vmatprep.subr.bf16.mxu0 %v3895_v12  ;;  %v4017_v12 = vld [vmem:[%s5326_s1 + $0x230] ss:$12 sps:$4 sm:$0xff]  }
  0x85   :  { %3577 = vmatpush3.bf16.msra.mxu1 %v4017_v12 }
  0x86   :  { %3584 = vmatprep.subr.bf16.mxu1 %v4018_v13 }
  0x87   :  { %1442 = vmatpush1.bf16.msra.mxu0 %v3893_v19  ;;  %v4019_v19 = vld [vmem:[%s5326_s1 + $0x308] ss:$12 sps:$4 sm:$0xff]  }
  0x88   :  { %1443 = vmatprep.subr.bf16.mxu0 %v3898_v20  ;;  %v4020_v20 = vld [vmem:[%s5326_s1 + $0x3e0] ss:$12 sps:$4 sm:$0xff]   ;;  %1599 = vmatmul.mubr.bf16.vlgmr.msra.gmra.mrb[4].mxu1 %v4440_v10  ;;  %v4023_v10 = vld [vmem:[%s5326_s1 + $0x338] ss:$12 sps:$4 sm:$0xff]  }
  0x89   :  { %3585 = vmatpush3.bf16.msra.mxu1 %v4019_v19  ;;  %1639 = vmatprep.mubr.bf16.mxu1 %v4453_v14  ;;  %v3944_v14 = vld [vmem:[%s5326_s1 + $0x4b0] ss:$12 sps:$4 sm:$0xff]  }
  0x8a   :  { %3586 = vmatprep.subr.bf16.mxu1 %v4020_v20 }
  0x8b   :  { %1444 = vmatpush1.bf16.msra.mxu0 %v3896_v23  ;;  %v3943_v23 = vld [vmem:[%s5326_s1 + $0x49c] ss:$12 sps:$4 sm:$0xff]  }
  0x8c   :  { %1445 = vmatprep.subr.bf16.mxu0 %v3901_v24  ;;  %v4673_v24 = vcombine.high %v4648_v17, %v4653_v18 }
  0x8d   :  { %3587 = vmatpush3.bf16.msra.mxu1 %v4021_v25 }
  0x8e   :  { %3588 = vmatprep.subr.bf16.mxu1 %v4022_v8 }
  0x8f   :  { %1446 = vmatpush1.bf16.msra.mxu0 %v3899_v27  ;;  %v4024_v27 = vld [vmem:[%s5326_s1 + $0x410] ss:$12 sps:$4 sm:$0xff]  }
  0x90   :  { %1447 = vmatprep.subr.bf16.mxu0 %v3904_v28  ;;  %v3949_v28 = vld [vmem:[%s5326_s1 + $0x4cc] ss:$12 sps:$4 sm:$0xff]  }
  0x91   :  { %3589 = vmatpush3.bf16.msra.mxu1 %v4023_v10 }
  0x92   :  { %3590 = vmatprep.subr.bf16.mxu1 %v4024_v27 }
  0x93   :  { %1448 = vmatpush1.bf16.msra.mxu0 %v3902_v31  ;;  %v3947_v31 = vld [vmem:[%s5326_s1 + $0x4c8] ss:$12 sps:$4 sm:$0xff]  }
  0x94   :  { %1449 = vmatprep.subr.bf16.mxu0 %v3907_v32  ;;  %v3952_v32 = vld [vmem:[%s5326_s1 + $0x4e4] ss:$12 sps:$4 sm:$0xff]  }
  0x95   :  { %3591 = vmatpush3.bf16.msra.mxu1 %v4025_v29 }
  0x96   :  { %3592 = vmatprep.subr.bf16.mxu1 %v4026_v30 }
  0x97   :  { %1450 = vmatpush1.bf16.msra.mxu0 %v3905_v35  ;;  %v3950_v35 = vld [vmem:[%s5326_s1 + $0x4e0] ss:$12 sps:$4 sm:$0xff]  }
  0x98   :  { %1451 = vmatprep.subr.bf16.mxu0 %v3910_v36  ;;  %v3955_v36 = vld [vmem:[%s5326_s1 + $0x4fc] ss:$12 sps:$4 sm:$0xff]  }
  0x99   :  { %3593 = vmatpush3.bf16.msra.mxu1 %v4027_v33 }
  0x9a   :  { %3594 = vmatprep.subr.bf16.mxu1 %v4028_v34 }
  0x9b   :  { %1452 = vmatpush1.bf16.msra.mxu0 %v3908_v37  ;;  %v4029_v37 = vld [vmem:[%s5326_s1 + $0x380] ss:$12 sps:$4 sm:$0xff]  }
  0x9c   :  { %1453 = vmatprep.subr.bf16.mxu0 %v3913_v41  ;;  %v3953_v41 = vld [vmem:[%s5326_s1 + $0x4f8] ss:$12 sps:$4 sm:$0xff]  }
  0x9d   :  { %3595 = vmatpush3.bf16.msra.mxu1 %v4029_v37 }
  0x9f   :  { %1454 = vmatpush1.bf16.msra.mxu0 %v3911_v45 }
  0xa0   :  { %1455 = vmatprep.subr.bf16.mxu0 %v3916_v46 }
  0xa3   :  { %1456 = vmatpush1.bf16.msra.mxu0 %v3914_v49 }
  0xa4   :  { %1457 = vmatprep.subr.bf16.mxu0 %v3919_v50 }
  0xa7   :  { %1458 = vmatpush1.bf16.msra.mxu0 %v3917_v53 }
  0xa8   :  { %1459 = vmatprep.subr.bf16.mxu0 %v3922_v54 }
  0xab   :  { %1460 = vmatpush1.bf16.msra.mxu0 %v3920_v56 }
  0xac   :  { %1461 = vmatprep.subr.bf16.mxu0 %v3925_v40 }
  0xaf   :  { %1462 = vmatpush1.bf16.msra.mxu0 %v3923_v59 }
  0xb0   :  { %1463 = vmatprep.subr.bf16.mxu0 %v3928_v60 }
  0xb3   :  { %1464 = vmatpush1.bf16.msra.mxu0 %v3926_v63 }
  0xb4   :  { %1465 = vmatprep.subr.bf16.mxu0 %v3931_v0 }
  0xb7   :  { %1466 = vmatpush1.bf16.msra.mxu0 %v3929_v3 }
  0xb8   :  { %1467 = vmatprep.subr.bf16.mxu0 %v3934_v4 }
  0xbb   :  { %1468 = vmatpush1.bf16.msra.mxu0 %v3932_v7 }
  0xbc   :  { %1469 = vmatprep.subr.bf16.mxu0 %v3937_v11 }
  0xbf   :  { %1470 = vmatpush1.bf16.msra.mxu0 %v3935_v15 }
  0xc0   :  { %1482 = vmatprep.subr.bf16.mxu0 %v3940_v16 }
  0xc2   :  { %1472 = vmatmul.mubr.bf16.vlgmr.msra.gmra.mrb[0].mxu0 %v4666_v22 }
  0xc3   :  { %1483 = vmatpush1.bf16.msra.mxu0 %v3938_v21  ;;  %1514 = vmatprep.mubr.bf16.mxu0 %v4673_v24 }
  0xc4   :  { %1484 = vmatprep.subr.bf16.mxu0 %v3943_v23 }
  0xc7   :  { %1485 = vmatpush1.bf16.msra.mxu0 %v3941_v9 }
  0xc8   :  { %1486 = vmatprep.subr.bf16.mxu0 %v3946_v26 }
  0xcb   :  { %1487 = vmatpush1.bf16.msra.mxu0 %v3944_v14 }
  0xcc   :  { %1488 = vmatprep.subr.bf16.mxu0 %v3949_v28 }
  0xcf   :  { %1489 = vmatpush1.bf16.msra.mxu0 %v3947_v31 }
  0xd0   :  { %1490 = vmatprep.subr.bf16.mxu0 %v3952_v32 }
  0xd3   :  { %1491 = vmatpush1.bf16.msra.mxu0 %v3950_v35 }
  0xd4   :  { %1492 = vmatprep.subr.bf16.mxu0 %v3955_v36 }
  0xd5   :  { %11 = vsyncpa [#allocation5], 0  ;;  %3596 = vmatprep.subr.bf16.mxu1 %v4030_v39  ;;  %v4032_v44 = vld [vmem:[%s5326_s1 + $0x470] ss:$12 sps:$4 sm:$0xff]   ;;  %v3961_v46 = vld [vmem:[%s5326_s1 + $0x52c] ss:$12 sps:$4 sm:$0xff]   ;;  %v3217_v21 = vcombine.low %v4648_v17, %v4653_v18 }
  0xd6   :  { %v3956_v45 = vld [vmem:[%s5326_s1 + $0x510] ss:$12 sps:$4 sm:$0xff]   ;;  %3597 = vmatpush3.bf16.msra.mxu1 %v4031_v43  ;;  %v4034_v48 = vld [vmem:[%s5326_s1 + $0x548] ss:$12 sps:$4 sm:$0xff]   ;;  %v4036_v52 = vld [vmem:[%s5326_s1 + $0x560] ss:$12 sps:$4 sm:$0xff]  }
  0xd7   :  { %1493 = vmatpush1.bf16.msra.mxu0 %v3953_v41  ;;  %v4033_v47 = vld [vmem:[%s5326_s1 + $0x3b0] ss:$12 sps:$4 sm:$0xff]   ;;  %3598 = vmatprep.subr.bf16.mxu1 %v4032_v44  ;;  %v3959_v49 = vld [vmem:[%s5326_s1 + $0x528] ss:$12 sps:$4 sm:$0xff]   ;;  %v3962_v53 = vld [vmem:[%s5326_s1 + $0x540] ss:$12 sps:$4 sm:$0xff]  }
  0xd8   :  { %1494 = vmatprep.subr.bf16.mxu0 %v3958_v42  ;;  %v3964_v50 = vld [vmem:[%s5326_s1 + $0x544] ss:$12 sps:$4 sm:$0xff]   ;;  %v4035_v51 = vld [vmem:[%s5326_s1 + $0x488] ss:$12 sps:$4 sm:$0xff]   ;;  %v4037_v38 = vld [vmem:[%s5326_s1 + $0x4a0] ss:$12 sps:$4 sm:$0xff]  }
  0xd9   :  { %v3967_v54 = vld [vmem:[%s5326_s1 + $0x55c] ss:$12 sps:$4 sm:$0xff]   ;;  %v4038_v55 = vld [vmem:[%s5326_s1 + $0x578] ss:$12 sps:$4 sm:$0xff]   ;;  %v3970_v40 = vld [vmem:[%s5326_s1 + $0x574] ss:$12 sps:$4 sm:$0xff]  }
  0xda   :  { %3599 = vmatpush3.bf16.msra.mxu1 %v4033_v47  ;;  %v3965_v56 = vld [vmem:[%s5326_s1 + $0x558] ss:$12 sps:$4 sm:$0xff]   ;;  %v4040_v58 = vld [vmem:[%s5326_s1 + $0x590] ss:$12 sps:$4 sm:$0xff]   ;;  %v4042_v62 = vld [vmem:[%s5326_s1 + $0x5a8] ss:$12 sps:$4 sm:$0xff]  }
  0xdb   :  { %1495 = vmatpush1.bf16.msra.mxu0 %v3956_v45  ;;  %3606 = vmatprep.subr.bf16.mxu1 %v4034_v48  ;;  %v4039_v57 = vld [vmem:[%s5326_s1 + $0x4b8] ss:$12 sps:$4 sm:$0xff]   ;;  %v3968_v59 = vld [vmem:[%s5326_s1 + $0x570] ss:$12 sps:$4 sm:$0xff]   ;;  %v3971_v63 = vld [vmem:[%s5326_s1 + $0x588] ss:$12 sps:$4 sm:$0xff]  }
  0xdc   :  { %1496 = vmatprep.subr.bf16.mxu0 %v3961_v46  ;;  %v3973_v60 = vld [vmem:[%s5326_s1 + $0x58c] ss:$12 sps:$4 sm:$0xff]   ;;  %v4041_v61 = vld [vmem:[%s5326_s1 + $0x4d0] ss:$12 sps:$4 sm:$0xff]   ;;  %v4043_v1 = vld [vmem:[%s5326_s1 + $0x4e8] ss:$12 sps:$4 sm:$0xff]  }
  0xdd   :  { %1640 = vmatmul.mubr.bf16.vlgmr.msra.gmra.mrb[8].mxu1 %v4666_v22  ;;  %v3976_v0 = vld [vmem:[%s5326_s1 + $0x5a4] ss:$12 sps:$4 sm:$0xff]   ;;  %v4044_v2 = vld [vmem:[%s5326_s1 + $0x5c0] ss:$12 sps:$4 sm:$0xff]   ;;  %v3979_v4 = vld [vmem:[%s5326_s1 + $0x5bc] ss:$12 sps:$4 sm:$0xff]  }
  0xde   :  { %3607 = vmatpush3.bf16.msra.mxu1 %v4035_v51  ;;  %1680 = vmatprep.mubr.bf16.mxu1 %v4673_v24  ;;  %v3974_v3 = vld [vmem:[%s5326_s1 + $0x5a0] ss:$12 sps:$4 sm:$0xff]   ;;  %v4046_v6 = vld [vmem:[%s5326_s1 + $0x5d8] ss:$12 sps:$4 sm:$0xff]   ;;  %v4048_v13 = vld [vmem:[%s5326_s1 + $0x5f0] ss:$12 sps:$4 sm:$0xff]  }
  0xdf   :  { %1497 = vmatpush1.bf16.msra.mxu0 %v3959_v49  ;;  %3608 = vmatprep.subr.bf16.mxu1 %v4036_v52  ;;  %v4045_v5 = vld [vmem:[%s5326_s1 + $0x500] ss:$12 sps:$4 sm:$0xff]   ;;  %v3977_v7 = vld [vmem:[%s5326_s1 + $0x5b8] ss:$12 sps:$4 sm:$0xff]   ;;  %v3980_v15 = vld [vmem:[%s5326_s1 + $0x5d0] ss:$12 sps:$4 sm:$0xff]  }
  0xe0   :  { %1498 = vmatprep.subr.bf16.mxu0 %v3964_v50  ;;  %v3982_v11 = vld [vmem:[%s5326_s1 + $0x5d4] ss:$12 sps:$4 sm:$0xff]   ;;  %v4047_v12 = vld [vmem:[%s5326_s1 + $0x518] ss:$12 sps:$4 sm:$0xff]   ;;  %v4049_v19 = vld [vmem:[%s5326_s1 + $0x530] ss:$12 sps:$4 sm:$0xff]  }
  0xe1   :  { %v3985_v16 = vld [vmem:[%s5326_s1 + $0x5ec] ss:$12 sps:$4 sm:$0xff]   ;;  %v3983_v20 = vld [vmem:[%s5326_s1 + $0x5e8] ss:$12 sps:$4 sm:$0xff]   ;;  %v4050_v22 = vld [vmem:[%s5327_s2] sm:$0xff]   ;;  %v4166_v23 = vmov 0.0  }
  0xe2   :  { %3609 = vmatpush3.bf16.msra.mxu1 %v4037_v38  ;;  %vm4167_vm0 = vmmov 0   ;;  %v4051_v24 = vld [vmem:[%s5327_s2 + $0x8] sm:$0xff]   ;;  %v3411_v43 = vld [vmem:[%s5328_s3] ss:$0 sm:$0xff]  ;;  %vm1691_vm1 = vcmask 523264   ;;  %vm1710_vm2 = vcmask 261120  }
  0xe3   :  { %1499 = vmatpush1.bf16.msra.mxu0 %v3962_v53  ;;  %3610 = vmatprep.subr.bf16.mxu1 %v4038_v55  ;;  %s4168_s0 = smov 32   ;;  %vm1800_vm3 = vcmask 523520   ;;  %s4169_s10 = smov 64   ;;  %vm1906_vm4 = vcmask 785920   ;;  %vm1959_vm5 = vcmask 785408   ;;  %vm2029_vm6 = vcmask 1048320  }
  0xe4   :  { %1500 = vmatprep.subr.bf16.mxu0 %v3967_v54  ;;  %s4170_s29 = smov 96  }
  0xe6   :  { %3611 = vmatpush3.bf16.msra.mxu1 %v4039_v57 }
  0xe7   :  { %1501 = vmatpush1.bf16.msra.mxu0 %v3965_v56  ;;  %3612 = vmatprep.subr.bf16.mxu1 %v4040_v58 }
  0xe8   :  { %1502 = vmatprep.subr.bf16.mxu0 %v3970_v40 }
  0xea   :  { %3613 = vmatpush3.bf16.msra.mxu1 %v4041_v61  ;;  %v4052_v61 = vld [vmem:[%s5327_s2 + $0x10] sm:$0xff]  }
  0xeb   :  { %1503 = vmatpush1.bf16.msra.mxu0 %v3968_v59  ;;  %3614 = vmatprep.subr.bf16.mxu1 %v4042_v62  ;;  %v4053_v62 = vld [vmem:[%s5327_s2 + $0x18] sm:$0xff]  }
  0xec   :  { %1504 = vmatprep.subr.bf16.mxu0 %v3973_v60  ;;  %v3416_v60 = vld [vmem:[%s5328_s3 + $0x1] ss:$0 sm:$0xff] }
  0xed   :  { %1792 = vrot.lane.b32.xlu1 %v3416_v60, %s4168_s0 }
  0xee   :  { %3615 = vmatpush3.bf16.msra.mxu1 %v4043_v1 }
  0xef   :  { %1505 = vmatpush1.bf16.msra.mxu0 %v3971_v63  ;;  %3616 = vmatprep.subr.bf16.mxu1 %v4044_v2  ;;  %v4054_v63 = vld [vmem:[%s5327_s2 + $0x20] sm:$0xff]   ;;  %v4055_v2 = vld [vmem:[%s5327_s2 + $0x28] sm:$0xff]  }
  0xf0   :  { %1506 = vmatprep.subr.bf16.mxu0 %v3976_v0 }
  0xf2   :  { %3617 = vmatpush3.bf16.msra.mxu1 %v4045_v5 }
  0xf3   :  { %1507 = vmatpush1.bf16.msra.mxu0 %v3974_v3  ;;  %3618 = vmatprep.subr.bf16.mxu1 %v4046_v6 }
  0xf4   :  { %1508 = vmatprep.subr.bf16.mxu0 %v3979_v4 }
  0xf6   :  { %3619 = vmatpush3.bf16.msra.mxu1 %v4047_v12 }
  0xf7   :  { %1509 = vmatpush1.bf16.msra.mxu0 %v3977_v7  ;;  %3620 = vmatprep.subr.bf16.mxu1 %v4048_v13 }
  0xf8   :  { %1510 = vmatprep.subr.bf16.mxu0 %v3982_v11 }
  0xfa   :  { %3621 = vmatpush3.bf16.msra.mxu1 %v4049_v19 }
  0xfb   :  { %1511 = vmatpush1.bf16.msra.mxu0 %v3980_v15  ;;  %3702 = vmatprep.subr.bf16.mxu1 %v4166_v23 }
  0xfc   :  { %1512 = vmatprep.subr.bf16.mxu0 %v3985_v16 }
  0xfd   :  { %1681 = vmatmul.mubr.bf16.vlgmr.msra.gmra.mrb[12].mxu1 %v3217_v21 }
  0xfe   :  { %3706 = vmatprep.mubr.msk.bf16.mxu1 %vm4167_vm0, %v4166_v23  ;;  %3703 = vmatpush3.bf16.msra.mxu1 %v4050_v22  ;;  %v4056_v22 = vld [vmem:[%s5327_s2 + $0x30] sm:$0xff]  }
  0xff   :  { %1513 = vmatpush1.bf16.msra.mxu0 %v3983_v20  ;;  %3704 = vmatprep.subr.bf16.mxu1 %v4166_v23 }
 0x102   :  { %1515 = vmatmul.mubr.bf16.vlgmr.msra.gmra.mrb[0].mxu0 %v3217_v21  ;;  %3705 = vmatpush3.bf16.msra.mxu1 %v4051_v24  ;;  %v4057_v24 = vld [vmem:[%s5327_s2 + $0x38] sm:$0xff]  }
 0x103   :  { %3710 = vmatprep.subr.bf16.mxu1 %v4166_v23 }
 0x120   :  { %v3556_v17 = vpop.f32.mrb[0].mxu1 }
 0x121   :  { %v3557_v18 = vpop.f32.mrb[1].mxu1 }
 0x122   :  { %v3558_v25 = vadd.f32 %v3557_v18, %v3556_v17  ;;  %v3559_v8 = vpop.f32.mrb[2].mxu1  ;;  %v4058_v17 = vld [vmem:[%s5327_s2 + $0x40] sm:$0xff]   ;;  %v4059_v18 = vld [vmem:[%s5327_s2 + $0x48] sm:$0xff]  }
 0x123   :  { %v3560_v9 = vpop.f32.mrb[3].mxu1 }
 0x124   :  { %v3561_v26 = vadd.f32 %v3560_v9, %v3559_v8  ;;  %v4061_v8 = vld [vmem:[%s5327_s2 + $0x58] sm:$0xff]  }
 0x15b   :  { %v3578_v10 = vpop.f32.mrb[4].mxu1 }
 0x15c   :  { %v3579_v27 = vpop.f32.mrb[5].mxu1 }
 0x15d   :  { %v3580_v14 = vadd.f32 %v3579_v27, %v3578_v10  ;;  %v3581_v28 = vpop.f32.mrb[6].mxu1  ;;  %v3423_v27 = vld [vmem:[%s5328_s3 + $0x2] ss:$0 sm:$0xff] }
 0x15e   :  { %v3582_v29 = vpop.f32.mrb[7].mxu1 }
 0x15f   :  { %v1601_v30 = vadd.f32 %v3580_v14, %v3558_v25  ;;  %v3583_v31 = vadd.f32 %v3582_v29, %v3581_v28  ;;  %v1793_v7 = vpop.permute.xlu1 %1792  ;;  %v4060_v25 = vld [vmem:[%s5327_s2 + $0x50] sm:$0xff]  }
 0x161   :  { %v1604_v32 = vadd.f32 %v3583_v31, %v3561_v26 }
 0x1b0   :  { %v3600_v33 = vpop.f32.mrb[8].mxu1 }
 0x1b1   :  { %v3601_v34 = vpop.f32.mrb[9].mxu1 }
 0x1b2   :  { %v3602_v35 = vadd.f32 %v3601_v34, %v3600_v33  ;;  %v3603_v36 = vpop.f32.mrb[10].mxu1 }
 0x1b3   :  { %v3604_v37 = vpop.f32.mrb[11].mxu1 }
 0x1b4   :  { %v1642_v39 = vadd.f32 %v3602_v35, %v1601_v30  ;;  %v3605_v41 = vadd.f32 %v3604_v37, %v3603_v36 }
 0x1b6   :  { %v1645_v42 = vadd.f32 %v3605_v41, %v1604_v32  ;;  %v4062_v41 = vld [vmem:[%s5327_s2 + $0x60] sm:$0xff]  }
 0x1d0   :  { %v3622_v44 = vpop.f32.mrb[12].mxu1 }
 0x1d1   :  { %v3623_v45 = vpop.f32.mrb[13].mxu1 }
 0x1d2   :  { %v3624_v47 = vadd.f32 %v3623_v45, %v3622_v44  ;;  %v3625_v48 = vpop.f32.mrb[14].mxu1  ;;  %v4065_v44 = vld [vmem:[%s5327_s2 + $0x78] sm:$0xff]   ;;  %v4066_v45 = vld [vmem:[%s5327_s2 + $0x80] sm:$0xff]  }
 0x1d3   :  { %v3626_v51 = vpop.f32.mrb[15].mxu1 }
 0x1d4   :  { %v1683_v53 = vadd.f32 %v3624_v47, %v1642_v39  ;;  %v3627_v54 = vadd.f32 %v3626_v51, %v3625_v48  ;;  %v4067_v47 = vld [vmem:[%s5327_s2 + $0x88] sm:$0xff]   ;;  %v4068_v48 = vld [vmem:[%s5327_s2 + $0x90] sm:$0xff]  }
 0x1d5   :  { %v4871_v46 = vpop.f32.mrb[0].mxu0 }
 0x1d6   :  { %v4873_v49 = vpop.f32.mrb[1].mxu0  ;;  %v1705_v50 = vadd.f32 %v3411_v43, %v4871_v46  ;;  %1692 = vst.msk [vmem:[#allocation2 + $0x10] sm:$0xff] %vm1691_vm1, %v1683_v53  ;;  %v1686_v56 = vadd.f32 %v3627_v54, %v1645_v42  ;;  %v4063_v42 = vld [vmem:[%s5327_s2 + $0x68] sm:$0xff]  }
 0x1d7   :  { %1690 = vst [vmem:[#allocation2 + $0x8] sm:$0xff] %v4873_v49  ;;  %v4877_v52 = vpop.f32.mrb[2].mxu0 }
 0x1d8   :  { %v4879_v38 = vpop.f32.mrb[3].mxu0  ;;  %v1706_v55 = vadd.f32 %v3411_v43, %v4877_v52  ;;  %v1707_v40 = vmax.f32 %v1705_v50, 0.0  ;;  %1695 = vst.msk [vmem:[#allocation2 + $0x28] sm:$0xff] %vm1691_vm1, %v1686_v56  ;;  %v4064_v43 = vld [vmem:[%s5327_s2 + $0x70] sm:$0xff]   ;;  %v4069_v50 = vld [vmem:[%s5327_s2 + $0x98] sm:$0xff]  }
 0x1d9   :  { %1694 = vst [vmem:[#allocation2 + $0x20] sm:$0xff] %v4879_v38 }
 0x1da   :  { %v1708_v57 = vmax.f32 %v1706_v55, 0.0  ;;  %v3432_v55 = vld [vmem:[%s5328_s3 + $0x3] ss:$0 sm:$0xff] }
 0x1dc   :  { %v1709_v58 = vpack.c.bf16 %v1708_v57, %v1707_v40  ;;  %v4171_v40 = vmov 0  }
 0x1dd   :  { %2598 = vmatprep.subr.bf16.mxu0 %v4171_v40 }
 0x1de   :  { %1711 = vst.msk [vmem:[#allocation3] sm:$0xff] %vm1710_vm2, %v1709_v58 }
 0x1e5   :  { %v1714_v59 = vld [vmem:[#allocation3] sm:$0xff] }
 0x1e6   :  { %3707 = vmatmul.mubr.msk.bf16.vlgmr.msra.gmra.mrb[16].mxu1 %vm1710_vm2, %v1714_v59 }
 0x1e7   :  { %3718 = vmatprep.mubr.msk.bf16.mxu1 %vm4167_vm0, %v4166_v23  ;;  %3711 = vmatpush3.bf16.msra.mxu1 %v4052_v61 }
 0x1e8   :  { %3712 = vmatprep.subr.bf16.mxu1 %v4166_v23 }
 0x1eb   :  { %3713 = vmatpush3.bf16.msra.mxu1 %v4053_v62 }
 0x1ec   :  { %3714 = vmatprep.subr.bf16.mxu1 %v4166_v23 }
 0x1ef   :  { %3715 = vmatpush3.bf16.msra.mxu1 %v4054_v63 }
 0x1f0   :  { %3716 = vmatprep.subr.bf16.mxu1 %v4166_v23 }
 0x1f3   :  { %3717 = vmatpush3.bf16.msra.mxu1 %v4055_v2 }
 0x1f4   :  { %3722 = vmatprep.subr.bf16.mxu1 %v4166_v23 }
 0x2b9   :  { %v1768_v0 = vpop.f32.mrb[16].mxu1 }
 0x2ba   :  { %1777 = vrot.lane.b32.xlu0 %v1768_v0, %s4168_s0  ;;  %v3708_v1 = vpop.f32.mrb[17].mxu1 }
 0x2bb   :  { %v1771_v3 = vpop.f32.mrb[18].mxu1 }
 0x2bc   :  { %v3709_v4 = vpop.f32.mrb[19].mxu1 }
 0x2be   :  { %1779 = vrot.lane.b32.xlu0 %v1771_v3, %s4168_s0  ;;  %v4070_v3 = vld [vmem:[%s5327_s2 + $0xa0] sm:$0xff]  }
 0x32c   :  { %v1778_v5 = vpop.permute.xlu0 %1777 }
 0x32d   :  { %v1783_v6 = vadd.f32 %v1778_v5, %v4871_v46  ;;  %v4073_v5 = vld [vmem:[%s5327_s2 + $0xb8] sm:$0xff]  }
 0x32f   :  { %v1795_v12 = vadd.f32 %v1793_v7, %v1783_v6  ;;  %v4074_v6 = vld [vmem:[%s5327_s2 + $0xc0] sm:$0xff]  }
 0x330   :  { %v1780_v11 = vpop.permute.xlu0 %1779 }
 0x331   :  { %v1784_v13 = vadd.f32 %v1780_v11, %v4877_v52  ;;  %v1797_v16 = vmax.f32 %v1795_v12, 0.0  ;;  %v4076_v11 = vld [vmem:[%s5327_s2 + $0xd0] sm:$0xff]   ;;  %v4077_v12 = vld [vmem:[%s5327_s2 + $0xd8] sm:$0xff]  }
 0x333   :  { %v1796_v15 = vadd.f32 %v1793_v7, %v1784_v13  ;;  %v4075_v7 = vld [vmem:[%s5327_s2 + $0xc8] sm:$0xff]   ;;  %v4078_v13 = vld [vmem:[%s5327_s2 + $0xe0] sm:$0xff]  }
 0x335   :  { %v1798_v19 = vmax.f32 %v1796_v15, 0.0  ;;  %v4079_v15 = vld [vmem:[%s5327_s2 + $0xe8] sm:$0xff]  }
 0x337   :  { %v1799_v20 = vpack.c.bf16 %v1798_v19, %v1797_v16  ;;  %v3442_v19 = vld [vmem:[%s5328_s3 + $0x4] ss:$0 sm:$0xff] }
 0x339   :  { %1801 = vst.msk [vmem:[#allocation3] sm:$0xff] %vm1800_vm3, %v1799_v20 }
 0x340   :  { %v1804_v21 = vld [vmem:[#allocation3] sm:$0xff] }
 0x341   :  { %3719 = vmatmul.mubr.msk.bf16.vlgmr.msra.gmra.mrb[20].mxu1 %vm1691_vm1, %v1804_v21 }
 0x342   :  { %3734 = vmatprep.mubr.msk.bf16.mxu1 %vm4167_vm0, %v4166_v23  ;;  %3723 = vmatpush3.bf16.msra.mxu1 %v4056_v22 }
 0x343   :  { %3724 = vmatprep.subr.bf16.mxu1 %v4166_v23 }
 0x346   :  { %3725 = vmatpush3.bf16.msra.mxu1 %v4057_v24 }
 0x347   :  { %3726 = vmatprep.subr.bf16.mxu1 %v4166_v23 }
 0x34a   :  { %3727 = vmatpush3.bf16.msra.mxu1 %v4058_v17 }
 0x34b   :  { %3728 = vmatprep.subr.bf16.mxu1 %v4166_v23 }
 0x34e   :  { %3729 = vmatpush3.bf16.msra.mxu1 %v4059_v18 }
 0x34f   :  { %3730 = vmatprep.subr.bf16.mxu1 %v4166_v23 }
 0x352   :  { %3731 = vmatpush3.bf16.msra.mxu1 %v4060_v25 }
 0x353   :  { %3732 = vmatprep.subr.bf16.mxu1 %v4166_v23 }
 0x356   :  { %3733 = vmatpush3.bf16.msra.mxu1 %v4061_v8 }
 0x357   :  { %3738 = vmatprep.subr.bf16.mxu1 %v4166_v23 }
 0x414   :  { %v1874_v9 = vpop.f32.mrb[20].mxu1 }
 0x415   :  { %1883 = vrot.lane.b32.xlu1 %v1874_v9, %s4169_s10  ;;  %v3720_v26 = vpop.f32.mrb[21].mxu1 }
 0x416   :  { %v1877_v10 = vpop.f32.mrb[22].mxu1 }
 0x417   :  { %1885 = vrot.lane.b32.xlu0 %v1877_v10, %s4169_s10  ;;  %v3721_v14 = vpop.f32.mrb[23].mxu1 }
 0x418   :  { %v4081_v14 = vld [vmem:[%s5327_s2 + $0xf8] sm:$0xff]  }
 0x419   :  { %1898 = vrot.lane.b32.xlu1 %v3423_v27, %s4169_s10  ;;  %v4080_v27 = vld [vmem:[%s5327_s2 + $0xf0] sm:$0xff]  }
 0x487   :  { %v1884_v28 = vpop.permute.xlu1 %1883 }
 0x488   :  { %v1889_v30 = vadd.f32 %v1884_v28, %v4871_v46  ;;  %v4082_v28 = vld [vmem:[%s5327_s2 + $0x100] sm:$0xff]  }
 0x489   :  { %v1886_v29 = vpop.permute.xlu0 %1885 }
 0x48a   :  { %v1890_v31 = vadd.f32 %v1886_v29, %v4877_v52  ;;  %v4083_v29 = vld [vmem:[%s5327_s2 + $0x108] sm:$0xff]  }
 0x48b   :  { %v1899_v32 = vpop.permute.xlu1 %1898 }
 0x48c   :  { %v1901_v33 = vadd.f32 %v1899_v32, %v1889_v30  ;;  %v1902_v34 = vadd.f32 %v1899_v32, %v1890_v31  ;;  %v4084_v30 = vld [vmem:[%s5327_s2 + $0x110] sm:$0xff]   ;;  %v4085_v31 = vld [vmem:[%s5327_s2 + $0x118] sm:$0xff]   ;;  %v4086_v32 = vld [vmem:[%s5327_s2 + $0x120] sm:$0xff]  }
 0x48e   :  { %v1903_v35 = vmax.f32 %v1901_v33, 0.0  ;;  %v1904_v36 = vmax.f32 %v1902_v34, 0.0  ;;  %v4087_v33 = vld [vmem:[%s5327_s2 + $0x128] sm:$0xff]   ;;  %v4088_v34 = vld [vmem:[%s5327_s2 + $0x130] sm:$0xff]  }
 0x490   :  { %v1905_v37 = vpack.c.bf16 %v1904_v36, %v1903_v35  ;;  %v4089_v35 = vld [vmem:[%s5327_s2 + $0x138] sm:$0xff]   ;;  %v4090_v36 = vld [vmem:[%s5327_s2 + $0x140] sm:$0xff]  }
 0x492   :  { %1907 = vst.msk [vmem:[#allocation3] sm:$0xff] %vm1906_vm4, %v1905_v37 }
 0x499   :  { %v1910_v39 = vld [vmem:[#allocation3] sm:$0xff] }
 0x49a   :  { %3735 = vmatmul.mubr.msk.bf16.vlgmr.msra.gmra.mrb[24].mxu1 %vm1959_vm5, %v1910_v39  ;;  %v4091_v39 = vld [vmem:[%s5327_s2 + $0x148] sm:$0xff]  }
 0x49b   :  { %3754 = vmatprep.mubr.msk.bf16.mxu1 %vm4167_vm0, %v4166_v23  ;;  %3739 = vmatpush3.bf16.msra.mxu1 %v4062_v41 }
 0x49c   :  { %3740 = vmatprep.subr.bf16.mxu1 %v4166_v23 }
 0x49f   :  { %3741 = vmatpush3.bf16.msra.mxu1 %v4063_v42 }
 0x4a0   :  { %3742 = vmatprep.subr.bf16.mxu1 %v4166_v23 }
 0x4a3   :  { %3743 = vmatpush3.bf16.msra.mxu1 %v4064_v43  ;;  %v3455_v43 = vld [vmem:[%s5328_s3 + $0x5] ss:$0 sm:$0xff] }
 0x4a4   :  { %3744 = vmatprep.subr.bf16.mxu1 %v4166_v23 }
 0x4a7   :  { %3745 = vmatpush3.bf16.msra.mxu1 %v4065_v44 }
 0x4a8   :  { %3746 = vmatprep.subr.bf16.mxu1 %v4166_v23 }
 0x4ab   :  { %3747 = vmatpush3.bf16.msra.mxu1 %v4066_v45 }
 0x4ac   :  { %3748 = vmatprep.subr.bf16.mxu1 %v4166_v23 }
 0x4af   :  { %3749 = vmatpush3.bf16.msra.mxu1 %v4067_v47 }
 0x4b0   :  { %3750 = vmatprep.subr.bf16.mxu1 %v4166_v23 }
 0x4b3   :  { %3751 = vmatpush3.bf16.msra.mxu1 %v4068_v48 }
 0x4b4   :  { %3752 = vmatprep.subr.bf16.mxu1 %v4166_v23 }
 0x4b7   :  { %3753 = vmatpush3.bf16.msra.mxu1 %v4069_v50 }
 0x4b8   :  { %2242 = vmatprep.subr.bf16.mxu1 %v4171_v40 }
 0x56d   :  { %v1997_v51 = vpop.f32.mrb[24].mxu1 }
 0x56e   :  { %2006 = vrot.lane.b32.xlu0 %v1997_v51, %s4170_s29  ;;  %v3736_v53 = vpop.f32.mrb[25].mxu1 }
 0x56f   :  { %v2000_v54 = vpop.f32.mrb[26].mxu1 }
 0x570   :  { %2008 = vrot.lane.b32.xlu1 %v2000_v54, %s4170_s29  ;;  %v3737_v56 = vpop.f32.mrb[27].mxu1 }
 0x572   :  { %2021 = vrot.lane.b32.xlu0 %v3432_v55, %s4170_s29 }
 0x5e0   :  { %v2007_v57 = vpop.permute.xlu0 %2006 }
 0x5e1   :  { %v2012_v59 = vadd.f32 %v2007_v57, %v4871_v46  ;;  %v4071_v46 = vld [vmem:[%s5327_s2 + $0xa8] sm:$0xff]  }
 0x5e2   :  { %v2009_v58 = vpop.permute.xlu1 %2008 }
 0x5e3   :  { %v2013_v60 = vadd.f32 %v2009_v58, %v4877_v52  ;;  %v4072_v52 = vld [vmem:[%s5327_s2 + $0xb0] sm:$0xff]  }
 0x5e4   :  { %v2022_v61 = vpop.permute.xlu0 %2021 }
 0x5e5   :  { %v2024_v62 = vadd.f32 %v2022_v61, %v2012_v59  ;;  %v2025_v63 = vadd.f32 %v2022_v61, %v2013_v60  ;;  %v4092_v59 = vld [vmem:[%s5327_s2 + $0x150] sm:$0xff]   ;;  %v4093_v60 = vld [vmem:[%s5327_s2 + $0x158] sm:$0xff]   ;;  %v4094_v61 = vld [vmem:[%s5327_s2 + $0x160] sm:$0xff]  }
 0x5e6   :  { %2599 = vmatpush1.bf16.msra.mxu0 %v4092_v59  ;;  %v4137_v59 = vld [vmem:[%s5327_s2 + $0x278] sm:$0xff]  }
 0x5e7   :  { %v2026_v0 = vmax.f32 %v2024_v62, 0.0  ;;  %v2027_v1 = vmax.f32 %v2025_v63, 0.0  ;;  %2600 = vmatprep.subr.bf16.mxu0 %v4171_v40  ;;  %v4095_v62 = vld [vmem:[%s5327_s2 + $0x168] sm:$0xff]   ;;  %v4096_v63 = vld [vmem:[%s5327_s2 + $0x170] sm:$0xff]  }
 0x5e9   :  { %v2028_v2 = vpack.c.bf16 %v2027_v1, %v2026_v0  ;;  %v4097_v0 = vld [vmem:[%s5327_s2 + $0x178] sm:$0xff]   ;;  %v4098_v1 = vld [vmem:[%s5327_s2 + $0x180] sm:$0xff]  }
 0x5ea   :  { %2601 = vmatpush1.bf16.msra.mxu0 %v4093_v60 }
 0x5eb   :  { %2030 = vst.msk [vmem:[#allocation3] sm:$0xff] %vm2029_vm6, %v2028_v2  ;;  %2602 = vmatprep.subr.bf16.mxu0 %v4171_v40  ;;  %v4099_v2 = vld [vmem:[%s5327_s2 + $0x188] sm:$0xff]  }
 0x5ee   :  { %2603 = vmatpush1.bf16.msra.mxu0 %v4094_v61 }
 0x5ef   :  { %2604 = vmatprep.subr.bf16.mxu0 %v4171_v40 }
 0x5f2   :  { %v4998_v4 = vld [vmem:[#allocation3] sm:$0xff]  ;;  %2605 = vmatpush1.bf16.msra.mxu0 %v4095_v62  ;;  %v3487_v62 = vld [vmem:[%s5328_s3 + $0x7] ss:$0 sm:$0xff] }
 0x5f3   :  { %3755 = vmatmul.mubr.bf16.vlgmr.msra.gmra.mrb[28].mxu1 %v4998_v4  ;;  %2606 = vmatprep.subr.bf16.mxu0 %v4171_v40 }
 0x5f4   :  { %2243 = vmatpush1.bf16.msra.mxu1 %v4070_v3  ;;  %v4100_v3 = vld [vmem:[%s5327_s2 + $0x190] sm:$0xff]  }
 0x5f5   :  { %2244 = vmatprep.subr.bf16.mxu1 %v4171_v40 }
 0x5f6   :  { %2607 = vmatpush1.bf16.msra.mxu0 %v4096_v63 }
 0x5f7   :  { %2608 = vmatprep.subr.bf16.mxu0 %v4171_v40 }
 0x5f8   :  { %2245 = vmatpush1.bf16.msra.mxu1 %v4071_v46  ;;  %v4101_v46 = vld [vmem:[%s5327_s2 + $0x198] sm:$0xff]  }
 0x5f9   :  { %2246 = vmatprep.subr.bf16.mxu1 %v4171_v40 }
 0x5fa   :  { %2609 = vmatpush1.bf16.msra.mxu0 %v4097_v0 }
 0x5fb   :  { %2610 = vmatprep.subr.bf16.mxu0 %v4171_v40 }
 0x5fc   :  { %2247 = vmatpush1.bf16.msra.mxu1 %v4072_v52  ;;  %v4102_v52 = vld [vmem:[%s5327_s2 + $0x1a0] sm:$0xff]  }
 0x5fd   :  { %2248 = vmatprep.subr.bf16.mxu1 %v4171_v40 }
 0x5fe   :  { %2611 = vmatpush1.bf16.msra.mxu0 %v4098_v1  ;;  %v2479_v1 = vld [vmem:[#allocation2 + $0x8] sm:$0xff] }
 0x5ff   :  { %2612 = vmatprep.subr.bf16.mxu0 %v4171_v40 }
 0x600   :  { %2249 = vmatpush1.bf16.msra.mxu1 %v4073_v5  ;;  %v4103_v5 = vld [vmem:[%s5327_s2 + $0x1a8] sm:$0xff]  }
 0x601   :  { %2250 = vmatprep.subr.bf16.mxu1 %v4171_v40 }
 0x602   :  { %2613 = vmatpush1.bf16.msra.mxu0 %v4099_v2  ;;  %v2480_v2 = vld [vmem:[#allocation2 + $0x20] sm:$0xff] }
 0x603   :  { %2614 = vmatprep.subr.bf16.mxu0 %v4171_v40 }
 0x604   :  { %2251 = vmatpush1.bf16.msra.mxu1 %v4074_v6  ;;  %v4104_v6 = vld [vmem:[%s5327_s2 + $0x1b0] sm:$0xff]  }
 0x605   :  { %2252 = vmatprep.subr.bf16.mxu1 %v4171_v40 }
 0x606   :  { %2615 = vmatpush1.bf16.msra.mxu0 %v4100_v3 }
 0x607   :  { %2616 = vmatprep.subr.bf16.mxu0 %v4171_v40 }
 0x608   :  { %2253 = vmatpush1.bf16.msra.mxu1 %v4075_v7 }
 0x609   :  { %2254 = vmatprep.subr.bf16.mxu1 %v4171_v40 }
 0x60a   :  { %2617 = vmatpush1.bf16.msra.mxu0 %v4101_v46 }
 0x60b   :  { %2618 = vmatprep.subr.bf16.mxu0 %v4171_v40 }
 0x60c   :  { %2255 = vmatpush1.bf16.msra.mxu1 %v4076_v11  ;;  %v4105_v11 = vld [vmem:[%s5327_s2 + $0x1b8] sm:$0xff]  }
 0x60d   :  { %2256 = vmatprep.subr.bf16.mxu1 %v4171_v40 }
 0x60e   :  { %2619 = vmatpush1.bf16.msra.mxu0 %v4102_v52 }
 0x60f   :  { %2620 = vmatprep.subr.bf16.mxu0 %v4171_v40 }
 0x610   :  { %2257 = vmatpush1.bf16.msra.mxu1 %v4077_v12 }
 0x611   :  { %2258 = vmatprep.subr.bf16.mxu1 %v4171_v40 }
 0x612   :  { %2621 = vmatpush1.bf16.msra.mxu0 %v4103_v5 }
 0x613   :  { %2622 = vmatprep.subr.bf16.mxu0 %v4171_v40 }
 0x614   :  { %2259 = vmatpush1.bf16.msra.mxu1 %v4078_v13 }
 0x615   :  { %2260 = vmatprep.subr.bf16.mxu1 %v4171_v40 }
 0x616   :  { %2623 = vmatpush1.bf16.msra.mxu0 %v4104_v6 }
 0x617   :  { %2624 = vmatprep.subr.bf16.mxu0 %v4171_v40 }
 0x618   :  { %2261 = vmatpush1.bf16.msra.mxu1 %v4079_v15  ;;  %v3470_v15 = vld [vmem:[%s5328_s3 + $0x6] ss:$0 sm:$0xff] }
 0x619   :  { %2412 = vmatprep.subr.bf16.mxu1 %v4171_v40 }
 0x61a   :  { %2625 = vmatpush1.bf16.msra.mxu0 %v4105_v11 }
 0x6c6   :  { %v2132_v16 = vpop.f32.mrb[28].mxu1 }
 0x6c7   :  { %v2139_v20 = vadd.f32 %v2132_v16, %v4873_v49  ;;  %v3756_v21 = vpop.f32.mrb[29].mxu1 }
 0x6c8   :  { %v2135_v22 = vpop.f32.mrb[30].mxu1 }
 0x6c9   :  { %v2149_v24 = vadd.f32 %v3442_v19, %v2139_v20  ;;  %v2140_v17 = vadd.f32 %v2135_v22, %v4879_v38  ;;  %v3757_v18 = vpop.f32.mrb[31].mxu1 }
 0x6cb   :  { %v2150_v25 = vadd.f32 %v3442_v19, %v2140_v17  ;;  %v2151_v8 = vmax.f32 %v2149_v24, 0.0 }
 0x6cd   :  { %v2152_v9 = vmax.f32 %v2150_v25, 0.0 }
 0x6cf   :  { %v2153_v26 = vpack.c.bf16 %v2152_v9, %v2151_v8 }
 0x6d1   :  { %2154 = vst.msk [vmem:[#allocation3 + $0x8] sm:$0xff] %vm1710_vm2, %v2153_v26  ;;  %v4106_v26 = vld [vmem:[%s5327_s2 + $0x200] sm:$0xff]  }
 0x6d8   :  { %v2158_v10 = vld [vmem:[#allocation3 + $0x8] sm:$0xff] }
 0x6d9   :  { %3453 = vmatprep.mubr.msk.bf16.mxu1 %vm1710_vm2, %v2158_v10  ;;  %v4109_v10 = vld [vmem:[%s5327_s2 + $0x240] sm:$0xff]  }
 0x6da   :  { %2275 = vmatmul.mubr.bf16.vlgmr.msra.gmra.mrb[32].mxu1 %v4998_v4 }
 0x6db   :  { %2413 = vmatpush1.bf16.msra.mxu1 %v4080_v27  ;;  %v4110_v27 = vld [vmem:[%s5327_s2 + $0x208] sm:$0xff]  }
 0x6dc   :  { %2414 = vmatprep.subr.bf16.mxu1 %v4171_v40 }
 0x6df   :  { %2415 = vmatpush1.bf16.msra.mxu1 %v4081_v14  ;;  %v4111_v14 = vld [vmem:[%s5327_s2 + $0x288] sm:$0xff]  }
 0x6e0   :  { %2416 = vmatprep.subr.bf16.mxu1 %v4171_v40 }
 0x6e3   :  { %2417 = vmatpush1.bf16.msra.mxu1 %v4082_v28  ;;  %v4112_v28 = vld [vmem:[%s5327_s2 + $0x1c8] sm:$0xff]  }
 0x6e4   :  { %2418 = vmatprep.subr.bf16.mxu1 %v4171_v40 }
 0x6e7   :  { %2419 = vmatpush1.bf16.msra.mxu1 %v4083_v29  ;;  %v4113_v29 = vld [vmem:[%s5327_s2 + $0x248] sm:$0xff]  }
 0x6e8   :  { %2420 = vmatprep.subr.bf16.mxu1 %v4171_v40 }
 0x6eb   :  { %2421 = vmatpush1.bf16.msra.mxu1 %v4084_v30  ;;  %v4114_v30 = vld [vmem:[%s5327_s2 + $0x210] sm:$0xff]  }
 0x6ec   :  { %2422 = vmatprep.subr.bf16.mxu1 %v4171_v40 }
 0x6ef   :  { %2423 = vmatpush1.bf16.msra.mxu1 %v4085_v31  ;;  %v4115_v31 = vld [vmem:[%s5327_s2 + $0x290] sm:$0xff]  }
 0x6f0   :  { %2424 = vmatprep.subr.bf16.mxu1 %v4171_v40 }
 0x6f3   :  { %2425 = vmatpush1.bf16.msra.mxu1 %v4086_v32  ;;  %v4116_v32 = vld [vmem:[%s5327_s2 + $0x1d0] sm:$0xff]  }
 0x6f4   :  { %2426 = vmatprep.subr.bf16.mxu1 %v4171_v40 }
 0x6f7   :  { %2427 = vmatpush1.bf16.msra.mxu1 %v4087_v33  ;;  %v4117_v33 = vld [vmem:[%s5327_s2 + $0x250] sm:$0xff]  }
 0x6f8   :  { %2428 = vmatprep.subr.bf16.mxu1 %v4171_v40 }
 0x6fb   :  { %2429 = vmatpush1.bf16.msra.mxu1 %v4088_v34  ;;  %v4118_v34 = vld [vmem:[%s5327_s2 + $0x218] sm:$0xff]  }
 0x6fc   :  { %2430 = vmatprep.subr.bf16.mxu1 %v4171_v40 }
 0x6ff   :  { %2431 = vmatpush1.bf16.msra.mxu1 %v4089_v35  ;;  %v4119_v35 = vld [vmem:[%s5327_s2 + $0x298] sm:$0xff]  }
 0x700   :  { %2432 = vmatprep.subr.bf16.mxu1 %v4171_v40 }
 0x703   :  { %2433 = vmatpush1.bf16.msra.mxu1 %v4090_v36  ;;  %v4120_v36 = vld [vmem:[%s5327_s2 + $0x1d8] sm:$0xff]  }
 0x704   :  { %2434 = vmatprep.subr.bf16.mxu1 %v4171_v40 }
 0x707   :  { %2435 = vmatpush1.bf16.msra.mxu1 %v4091_v39  ;;  %v4122_v39 = vld [vmem:[%s5327_s2 + $0x220] sm:$0xff]  }
 0x708   :  { %3652 = vmatprep.subr.bf16.mxu1 %v4106_v26 }
 0x7ad   :  { %v2276_v37 = vpop.f32.mrb[32].mxu1 }
 0x7ae   :  { %2285 = vrot.lane.b32.xlu1 %v2276_v37, %s4168_s0  ;;  %v2278_v41 = vpop.f32.mrb[33].mxu1  ;;  %v4121_v37 = vld [vmem:[%s5327_s2 + $0x258] sm:$0xff]  }
 0x7af   :  { %v2279_v42 = vpop.f32.mrb[34].mxu1  ;;  %v4123_v41 = vld [vmem:[%s5327_s2 + $0x2a0] sm:$0xff]  }
 0x7b0   :  { %2287 = vrot.lane.b32.xlu0 %v2279_v42, %s4168_s0  ;;  %v2281_v44 = vpop.f32.mrb[35].mxu1  ;;  %v4124_v42 = vld [vmem:[%s5327_s2 + $0x1e0] sm:$0xff]  }
 0x7b1   :  { %v4126_v44 = vld [vmem:[%s5327_s2 + $0x228] sm:$0xff]  }
 0x7b2   :  { %2300 = vrot.lane.b32.xlu1 %v3455_v43, %s4168_s0  ;;  %v4125_v43 = vld [vmem:[%s5327_s2 + $0x260] sm:$0xff]  }
 0x820   :  { %v2286_v45 = vpop.permute.xlu1 %2285 }
 0x821   :  { %v2291_v48 = vadd.f32 %v2286_v45, %v4873_v49  ;;  %v4127_v45 = vld [vmem:[%s5327_s2 + $0x2a8] sm:$0xff]  }
 0x822   :  { %v2288_v47 = vpop.permute.xlu0 %2287 }
 0x823   :  { %v2292_v50 = vadd.f32 %v2288_v47, %v4879_v38  ;;  %v4128_v47 = vld [vmem:[%s5327_s2 + $0x1e8] sm:$0xff]  }
 0x824   :  { %v2301_v51 = vpop.permute.xlu1 %2300 }
 0x825   :  { %v2303_v53 = vadd.f32 %v2301_v51, %v2291_v48  ;;  %v2304_v54 = vadd.f32 %v2301_v51, %v2292_v50  ;;  %v4129_v48 = vld [vmem:[%s5327_s2 + $0x268] sm:$0xff]   ;;  %v4130_v50 = vld [vmem:[%s5327_s2 + $0x230] sm:$0xff]  }
 0x826   :  { %v4131_v51 = vld [vmem:[%s5327_s2 + $0x2b0] sm:$0xff]  }
 0x827   :  { %v2305_v55 = vmax.f32 %v2303_v53, 0.0  ;;  %v2306_v56 = vmax.f32 %v2304_v54, 0.0  ;;  %v4132_v53 = vld [vmem:[%s5327_s2 + $0x1f0] sm:$0xff]  }
 0x828   :  { %v4133_v54 = vld [vmem:[%s5327_s2 + $0x270] sm:$0xff]  }
 0x829   :  { %v2307_v57 = vpack.c.bf16 %v2306_v56, %v2305_v55  ;;  %v4134_v55 = vld [vmem:[%s5327_s2 + $0x238] sm:$0xff]  }
 0x82a   :  { %v4135_v56 = vld [vmem:[%s5327_s2 + $0x2b8] sm:$0xff]  }
 0x82b   :  { %2308 = vst.msk [vmem:[#allocation3 + $0x8] sm:$0xff] %vm1800_vm3, %v2307_v57 }
 0x832   :  { %v2312_v58 = vld [vmem:[#allocation3 + $0x8] sm:$0xff] }
 0x833   :  { %3468 = vmatprep.mubr.msk.bf16.mxu1 %vm1691_vm1, %v2312_v58  ;;  %v4136_v58 = vld [vmem:[%s5327_s2 + $0x1f8] sm:$0xff]  }
 0x834   :  { %2445 = vmatmul.mubr.bf16.vlgmr.msra.gmra.mrb[36].mxu1 %v4998_v4 }
 0x907   :  { %v2446_v7 = vpop.f32.mrb[36].mxu1 }
 0x908   :  { %2455 = vrot.lane.b32.xlu0 %v2446_v7, %s4169_s10  ;;  %v2448_v12 = vpop.f32.mrb[37].mxu1 }
 0x909   :  { %v2449_v13 = vpop.f32.mrb[38].mxu1 }
 0x90a   :  { %2457 = vrot.lane.b32.xlu1 %v2449_v13, %s4169_s10  ;;  %v2451_v16 = vpop.f32.mrb[39].mxu1 }
 0x90b   :  { %v4138_v16 = vld [vmem:[%s5327_s2 + $0x2c0] sm:$0xff]  }
 0x90c   :  { %2470 = vrot.lane.b32.xlu0 %v3470_v15, %s4169_s10 }
 0x97a   :  { %v2456_v19 = vpop.permute.xlu0 %2455 }
 0x97b   :  { %v2461_v21 = vadd.f32 %v2456_v19, %v4873_v49  ;;  %v4107_v49 = vld [vmem:[%s5327_s2 + $0x280] sm:$0xff]   ;;  %v4139_v19 = vld [vmem:[%s5327_s2 + $0x2c8] sm:$0xff]  }
 0x97c   :  { %v2458_v20 = vpop.permute.xlu1 %2457  ;;  %3674 = vmatprep.subr.bf16.mxu0 %v4107_v49 }
 0x97d   :  { %v2462_v22 = vadd.f32 %v2458_v20, %v4879_v38  ;;  %v4108_v38 = vld [vmem:[%s5327_s2 + $0x1c0] sm:$0xff]  }
 0x97e   :  { %v2471_v24 = vpop.permute.xlu0 %2470  ;;  %3653 = vmatpush3.bf16.msra.mxu1 %v4108_v38 }
 0x97f   :  { %v2473_v17 = vadd.f32 %v2471_v24, %v2461_v21  ;;  %v2474_v40 = vadd.f32 %v2471_v24, %v2462_v22  ;;  %3654 = vmatprep.subr.bf16.mxu1 %v4110_v27  ;;  %v2666_v27 = vld [vmem:[#allocation2 + $0x28] sm:$0xff] }
 0x981   :  { %v2475_v18 = vmax.f32 %v2473_v17, 0.0  ;;  %v2476_v25 = vmax.f32 %v2474_v40, 0.0 }
 0x982   :  { %3655 = vmatpush3.bf16.msra.mxu1 %v4112_v28 }
 0x983   :  { %v2477_v8 = vpack.c.bf16 %v2476_v25, %v2475_v18  ;;  %3656 = vmatprep.subr.bf16.mxu1 %v4114_v30  ;;  %v2665_v25 = vld [vmem:[#allocation2 + $0x10] sm:$0xff] }
 0x985   :  { %2478 = vst.msk [vmem:[#allocation3 + $0x8] sm:$0xff] %vm1906_vm4, %v2477_v8  ;;  %v3505_v8 = vld [vmem:[%s5328_s3 + $0x8] ss:$0 sm:$0xff] }
 0x986   :  { %3657 = vmatpush3.bf16.msra.mxu1 %v4116_v32 }
 0x987   :  { %3658 = vmatprep.subr.bf16.mxu1 %v4118_v34 }
 0x98a   :  { %3659 = vmatpush3.bf16.msra.mxu1 %v4120_v36 }
 0x98b   :  { %3660 = vmatprep.subr.bf16.mxu1 %v4122_v39  ;;  %v4140_v39 = vld [vmem:[%s5329_s4] sm:$0xff]  }
 0x98c   :  { %v2482_v9 = vld [vmem:[#allocation3 + $0x8] sm:$0xff] }
 0x98d   :  { %3485 = vmatprep.mubr.msk.bf16.mxu0 %vm1959_vm5, %v2482_v9 }
 0x98e   :  { %2631 = vmatmul.mubr.bf16.vlgmr.msra.gmra.mrb[4].mxu0 %v4998_v4  ;;  %3661 = vmatpush3.bf16.msra.mxu1 %v4124_v42 }
 0x98f   :  { %3675 = vmatpush3.bf16.msra.mxu0 %v4109_v10  ;;  %3662 = vmatprep.subr.bf16.mxu1 %v4126_v44  ;;  %v4141_v44 = vld [vmem:[%s5329_s4 + $0x8] sm:$0xff]  }
 0x990   :  { %3676 = vmatprep.subr.bf16.mxu0 %v4111_v14 }
 0x992   :  { %3663 = vmatpush3.bf16.msra.mxu1 %v4128_v47 }
 0x993   :  { %3677 = vmatpush3.bf16.msra.mxu0 %v4113_v29  ;;  %3664 = vmatprep.subr.bf16.mxu1 %v4130_v50 }
 0x994   :  { %3678 = vmatprep.subr.bf16.mxu0 %v4115_v31 }
 0x996   :  { %3665 = vmatpush3.bf16.msra.mxu1 %v4132_v53 }
 0x997   :  { %3679 = vmatpush3.bf16.msra.mxu0 %v4117_v33  ;;  %3666 = vmatprep.subr.bf16.mxu1 %v4134_v55 }
 0x998   :  { %3680 = vmatprep.subr.bf16.mxu0 %v4119_v35 }
 0x99a   :  { %3667 = vmatpush3.bf16.msra.mxu1 %v4136_v58 }
 0x99b   :  { %3681 = vmatpush3.bf16.msra.mxu0 %v4121_v37  ;;  %3758 = vmatprep.subr.bf16.mxu1 %v4166_v23 }
 0x99c   :  { %3682 = vmatprep.subr.bf16.mxu0 %v4123_v41 }
 0x99f   :  { %3683 = vmatpush3.bf16.msra.mxu0 %v4125_v43  ;;  %v3526_v43 = vld [vmem:[%s5328_s3 + $0x9] ss:$0 sm:$0xff] }
 0x9a0   :  { %3684 = vmatprep.subr.bf16.mxu0 %v4127_v45 }
 0x9a3   :  { %3685 = vmatpush3.bf16.msra.mxu0 %v4129_v48 }
 0x9a4   :  { %3686 = vmatprep.subr.bf16.mxu0 %v4131_v51 }
 0x9a7   :  { %3687 = vmatpush3.bf16.msra.mxu0 %v4133_v54 }
 0x9a8   :  { %3688 = vmatprep.subr.bf16.mxu0 %v4135_v56 }
 0x9ab   :  { %3689 = vmatpush3.bf16.msra.mxu0 %v4137_v59 }
 0xa61   :  { %v2632_v57 = vpop.f32.mrb[4].mxu0 }
 0xa62   :  { %2641 = vrot.lane.b32.xlu1 %v2632_v57, %s4170_s29  ;;  %v2634_v60 = vpop.f32.mrb[5].mxu0 }
 0xa63   :  { %v2635_v61 = vpop.f32.mrb[6].mxu0 }
 0xa64   :  { %2643 = vrot.lane.b32.xlu0 %v2635_v61, %s4170_s29  ;;  %v2637_v63 = vpop.f32.mrb[7].mxu0 }
 0xa66   :  { %2656 = vrot.lane.b32.xlu1 %v3487_v62, %s4170_s29 }
 0xad4   :  { %v2642_v0 = vpop.permute.xlu1 %2641 }
 0xad5   :  { %v2647_v46 = vadd.f32 %v2642_v0, %v2479_v1 }
 0xad6   :  { %v2644_v3 = vpop.permute.xlu0 %2643 }
 0xad7   :  { %v2648_v52 = vadd.f32 %v2644_v3, %v2480_v2 }
 0xad8   :  { %v2657_v5 = vpop.permute.xlu1 %2656 }
 0xad9   :  { %v2659_v6 = vadd.f32 %v2657_v5, %v2647_v46  ;;  %v2660_v7 = vadd.f32 %v2657_v5, %v2648_v52 }
 0xadb   :  { %v2661_v11 = vmax.f32 %v2659_v6, 0.0  ;;  %v2662_v12 = vmax.f32 %v2660_v7, 0.0 }
 0xadd   :  { %v2663_v13 = vpack.c.bf16 %v2662_v12, %v2661_v11 }
 0xadf   :  { %2664 = vst.msk [vmem:[#allocation3 + $0x8] sm:$0xff] %vm2029_vm6, %v2663_v13 }
 0xae6   :  { %v2668_v15 = vld [vmem:[#allocation3 + $0x8] sm:$0xff] }
 0xae7   :  { %2829 = vmatprep.mubr.bf16.mxu1 %v2668_v15  ;;  %3038 = vmatprep.mubr.bf16.mxu0 %v2668_v15 }
 0xae8   :  { %2830 = vmatmul.mubr.bf16.vlgmr.msra.gmra.mrb[40].mxu1 %v4998_v4  ;;  %3039 = vmatmul.mubr.bf16.vlgmr.msra.gmra.mrb[8].mxu0 %v4998_v4 }
 0xae9   :  { %3762 = vmatprep.mubr.msk.bf16.mxu1 %vm4167_vm0, %v4166_v23  ;;  %3759 = vmatpush3.bf16.msra.mxu1 %v4138_v16 }
 0xaea   :  { %3760 = vmatprep.subr.bf16.mxu1 %v4166_v23 }
 0xaed   :  { %3761 = vmatpush3.bf16.msra.mxu1 %v4139_v19 }
 0xaee   :  { %3766 = vmatprep.subr.bf16.mxu1 %v4166_v23 }
 0xbbb   :  { %v3668_v20 = vpop.f32.mrb[40].mxu1  ;;  %v3690_v21 = vpop.f32.mrb[8].mxu0 }
 0xbbc   :  { %v3669_v4 = vpop.f32.mrb[41].mxu1  ;;  %v3691_v22 = vpop.f32.mrb[9].mxu0 }
 0xbbd   :  { %v3670_v24 = vadd.f32 %v3669_v4, %v3668_v20  ;;  %v3692_v17 = vadd.f32 %v3691_v22, %v3690_v21  ;;  %v3671_v40 = vpop.f32.mrb[42].mxu1  ;;  %v3693_v18 = vpop.f32.mrb[10].mxu0 }
 0xbbe   :  { %v3672_v9 = vpop.f32.mrb[43].mxu1  ;;  %v3694_v26 = vpop.f32.mrb[11].mxu0 }
 0xbbf   :  { %v2838_v49 = vadd.f32 %v3670_v24, %v2665_v25  ;;  %v3673_v38 = vadd.f32 %v3672_v9, %v3671_v40  ;;  %v3695_v10 = vadd.f32 %v3694_v26, %v3693_v18 }
 0xbc1   :  { %v2848_v14 = vadd.f32 %v3505_v8, %v2838_v49  ;;  %v2839_v28 = vadd.f32 %v3673_v38, %v2666_v27 }
 0xbc3   :  { %v2849_v29 = vadd.f32 %v3505_v8, %v2839_v28  ;;  %v2850_v30 = vmax.f32 %v2848_v14, 0.0 }
 0xbc5   :  { %v2851_v31 = vmax.f32 %v2849_v29, 0.0 }
 0xbc7   :  { %v2852_v32 = vpack.c.bf16 %v2851_v31, %v2850_v30 }
 0xbc9   :  { %2853 = vst.msk [vmem:[#allocation3 + $0x10] sm:$0xff] %vm1710_vm2, %v2852_v32 }
 0xbd0   :  { %v2858_v33 = vld [vmem:[#allocation3 + $0x10] sm:$0xff] }
 0xbd1   :  { %3763 = vmatmul.mubr.msk.bf16.vlgmr.msra.gmra.mrb[44].mxu1 %vm1710_vm2, %v2858_v33 }
 0xbd2   :  { %3770 = vmatprep.mubr.msk.bf16.mxu1 %vm4167_vm0, %v4166_v23  ;;  %3767 = vmatpush3.bf16.msra.mxu1 %v4140_v39 }
 0xbd3   :  { %3768 = vmatprep.subr.bf16.mxu1 %v4166_v23  ;;  %v3527_v23 = vld [vmem:[%s5330_s5] ss:$0 sm:$0xff] }
 0xbd6   :  { %3769 = vmatpush3.bf16.msra.mxu1 %v4141_v44 }
 0xca4   :  { %v3081_v34 = vpop.f32.mrb[44].mxu1 }
 0xca5   :  { %v3082_v35 = vadd.f32 %v3692_v17, %v3081_v34  ;;  %v3764_v36 = vpop.f32.mrb[45].mxu1 }
 0xca6   :  { %v3084_v37 = vpop.f32.mrb[46].mxu1 }
 0xca7   :  { %v3085_v41 = vadd.f32 %v3695_v10, %v3084_v37  ;;  %3090 = vrot.lane.b32.xlu0 %v3082_v35, %s4168_s0  ;;  %v3765_v42 = vpop.f32.mrb[47].mxu1 }
 0xca9   :  { %3092 = vrot.lane.b32.xlu1 %v3085_v41, %s4168_s0 }
 0xcab   :  { %3105 = vrot.lane.b32.xlu0 %v3526_v43, %s4168_s0  ;;  %s4172_s0 = smov [#allocation4]  }
 0xcac   :  { %s3200_s25 = sshll.u32 %s4172_s0, 4  ;;  %s3201_s25 = int_to_ptr.vmem [resolvable:$true] %s3200_s25 }
 0xcad   :  { %s4142_s26 = scalar_lea.vmem %s3201_s25, 128  ;;  %p4147_p1 = scmp.lt.s32.totalorder %s3201_s25, %s3201_s25 }
 0xcae   :  { %p4143_p0 = scmp.ne.s32.totalorder %s3201_s25, %s4142_s26  ;;  %p4148_p2 = scmp.lt.s32.totalorder %s4142_s26, %s4142_s26 }
 0xcb0   :  { %p4149_p3 = por %p4148_p2, %p4147_p1 }
 0xcb2   :  { %p4150_p4 = pnand %p4149_p3, %p4143_p0 }
 0xd19   :  { %v3091_v45 = vpop.permute.xlu0 %3090 }
 0xd1a   :  { %v3096_v48 = vadd.f32 %v3091_v45, %v2665_v25 }
 0xd1b   :  { %v3093_v47 = vpop.permute.xlu1 %3092 }
 0xd1c   :  { %v3097_v50 = vadd.f32 %v3093_v47, %v2666_v27 }
 0xd1d   :  { %v3106_v51 = vpop.permute.xlu0 %3105 }
 0xd1e   :  { %v3108_v53 = vadd.f32 %v3106_v51, %v3096_v48  ;;  %v3109_v54 = vadd.f32 %v3106_v51, %v3097_v50 }
 0xd20   :  { %v3110_v55 = vmax.f32 %v3108_v53, 0.0  ;;  %v3111_v56 = vmax.f32 %v3109_v54, 0.0 }
 0xd22   :  { %v3112_v57 = vmul.f32 1.050701, %v3110_v55  ;;  %v3113_v58 = vmul.f32 1.050701, %v3111_v56 }
 0xd24   :  { %v3114_v59 = vpack.c.bf16 %v3113_v58, %v3112_v57 }
 0xd26   :  { %3127 = vrot.lane.b32.xlu1 %v3114_v59, %s4170_s29 }
 0xd98   :  { %v3128_v60 = vpop.permute.xlu1 %3127 }
 0xd99   :  { %3771 = vmatmul.mubr.msk.bf16.vlgmr.msra.gmra.mrb[48].mxu1 %vm1710_vm2, %v3128_v60 }
 0xe6c   :  { %v3178_v61 = vpop.f32.mrb[48].mxu1 }
 0xe6d   :  { %v3772_v62 = vpop.f32.mrb[49].mxu1  ;;  %v3179_v0 = vadd.f32 %v3527_v23, %v3178_v61 }
 0xe6e   :  { %v3181_v63 = vpop.f32.mrb[50].mxu1 }
 0xe6f   :  { %v3182_v1 = vadd.f32 %v3527_v23, %v3181_v63  ;;  %v3773_v2 = vpop.f32.mrb[51].mxu1 }
 0xe71   :  { %v3538_v3 = vpack.c.bf16 %v3182_v1, %v3179_v0 }
 0xe73   :  { %3539 = vst [vmem:[#allocation4] sm:$0xff] %v3538_v3  }
 0xe74   :  { %4153 = shalt.err (!%p4150_p4)
}
 0xe75   :  { %s4154_s27 = scalar_lea.hbm %s5331_s6, 128 }
 0xe76   :  { %p4155_p5 = scmp.ne.s32.totalorder %s5331_s6, %s4154_s27  ;;  %p4158_p6 = scmp.lt.u32.totalorder %s4154_s27, %s5331_s6 }
 0xe78   :  { %p4160_p7 = pnand %p4158_p6, %p4155_p5 }
 0xe7a   :  { %4163 = shalt.err (!%p4160_p7)
}
 0xe7b   :  { %s4173_s9 = smov 4  }
 0xe7c   :  { %3206 = dma.vmem_to_hbm [thread:$0]  %s3201_s25, 128, %s5331_s6, [#allocation5], %s4169_s10, %s4169_s10, %s4173_s9  }
 0xe7d   :  { %4164 = dma.done.wait [#allocation5], 128  }
 0xe7e   :  { %4165 = vsyncadd [#allocation5], 4294967168 }
 0xe7f   :  { %3210 = vsyncpa [#allocation5], 1 }

</bundles_post_ra>
